<compile_context>
chip_gen: v6e
topology: v6e:2x2x1
jax: 0.10.0
libtpu: 0.0.40
codegen_flags: <defaults>
</compile_context>

<pallas_src>
import numpy as np

import jax
import jax.numpy as jnp
from jax.experimental import pallas as pl
from jax.experimental.pallas import tpu as pltpu


# ----------------------------- static geometry ------------------------------
_C0, _H0, _W0 = 3, 32, 32                       # input (NCHW)
_OC1, _K1 = 6, 3                                # conv1: 3x3, 3 -> 6
_PW1 = (_W0 - _K1 + 1) // 2                     # 15  pooled conv1 width
_HB1 = _H0 // 2                                 # 16  a1 rows / sample (15 valid)
_OC2, _K2 = 16, 5                               # conv2: 5x5, 6 -> 16
_PW2 = (_PW1 - _K2 + 1) // 2                    # 5   pooled conv2 width
_PH2 = (_PW1 - _K2 + 1) // 2                    # 5   pooled conv2 height
_HB2 = _HB1 // 2                                # 8   a2 rows / sample (5 valid)
_FC1, _FC2, _FC3 = 120, 84, 10
_LANES = 128                                    # lane-dense activation width


# ------------------------------ fused kernel --------------------------------

def _lenet_kernel(x_ref, t1_ref, b1_ref, t2_ref, b2_ref,
                  w1_ref, bf1_ref, wf2_ref, bf2_ref, wf3_ref, bf3_ref,
                  out_ref, p1_scr, a1_scr, p2_scr, a2_scr):
    f32, bf16 = jnp.float32, jnp.bfloat16
    tn = out_ref.shape[0]                       # batch tile
    r1 = tn * _H0 - (_K1 - 1)                   # conv1 rows across the tile
    r2 = tn * _HB1 - (_K2 - 1)                  # conv2 rows across the tile

    # ---- conv1: tap-accumulated Toeplitz matmuls (no im2col copies) --------
    # x rows = n*32 + h, lanes = c*32 + w (pad to 128).  Even|odd pooling
    # columns live in output lanes [0,128) | [128,256).
    y1 = jnp.dot(x_ref[0:r1, :].astype(bf16), t1_ref[0],
                 preferred_element_type=f32)
    for dy in range(1, _K1):
        y1 += jnp.dot(x_ref[dy:dy + r1, :].astype(bf16), t1_ref[dy],
                      preferred_element_type=f32)
    p1_scr[0:r1, :] = jnp.maximum(y1[:, :_LANES], y1[:, _LANES:])   # W-pool
    p1_scr[r1:, :] = jnp.zeros((_K1 - 1, _LANES), f32)              # keep finite
    # H-pool via stride-2 sublane reads, then bias + ReLU (valid after max).
    a1 = jnp.maximum(p1_scr[pl.ds(0, tn * _HB1, stride=2), :],
                     p1_scr[pl.ds(1, tn * _HB1, stride=2), :])
    a1_scr[...] = jnp.maximum(a1 + b1_ref[...], 0.0)

    # ---- conv2: same scheme on a1 (rows = n*16 + h, lanes = c*15 + w) ------
    y2 = jnp.dot(a1_scr[0:r2, :].astype(bf16), t2_ref[0],
                 preferred_element_type=f32)
    for dy in range(1, _K2):
        y2 += jnp.dot(a1_scr[dy:dy + r2, :].astype(bf16), t2_ref[dy],
                      preferred_element_type=f32)
    p2_scr[0:r2, :] = jnp.maximum(y2[:, :_LANES], y2[:, _LANES:])
    p2_scr[r2:, :] = jnp.zeros((_K2 - 1, _LANES), f32)
    a2 = jnp.maximum(p2_scr[pl.ds(0, tn * _HB2, stride=2), :],
                     p2_scr[pl.ds(1, tn * _HB2, stride=2), :])
    a2_scr[...] = jnp.maximum(a2 + b2_ref[...], 0.0)

    # ---- classifier: fc1 accumulated over the 5 spatial rows (== .view) ----
    h = jnp.dot(a2_scr[pl.ds(0, tn, stride=_HB2), :].astype(bf16), w1_ref[0],
                preferred_element_type=f32)
    for r in range(1, _PH2):
        h += jnp.dot(a2_scr[pl.ds(r, tn, stride=_HB2), :].astype(bf16),
                     w1_ref[r], preferred_element_type=f32)
    h = jnp.maximum(h + bf1_ref[...], 0.0)
    h = jnp.maximum(jnp.dot(h.astype(bf16), wf2_ref[...],
                            preferred_element_type=f32) + bf2_ref[...], 0.0)
    out_ref[...] = (jnp.dot(h.astype(bf16), wf3_ref[...],
                            preferred_element_type=f32) + bf3_ref[...])


# ------------------------- one-time weight preparation -----------------------

def _tap_toeplitz(w, in_w, out_w):
    """Per-tap Toeplitz blocks with the W-direction of MaxPool2d(2,2) fused.

    T[dy, c*in_w + iw, parity*128 + oc*out_w + j] = w[oc, c, dy, iw-(2j+parity)]
    so that sum_dy slab(dy) @ T[dy] gives conv output column ow = 2j+parity at
    lane parity*128 + oc*out_w + j, and max(lanes[:128], lanes[128:]) is the
    width-pooled conv output.  Unused lanes / rows are zero.
    """
    w = np.asarray(w, np.float32)
    oc_n, c_n, kh, kw = w.shape
    t = np.zeros((kh, _LANES, 2 * _LANES), np.float32)
    for dy in range(kh):
        for parity in range(2):
            for oc in range(oc_n):
                for c in range(c_n):
                    for j in range(out_w):
                        for dx in range(kw):
                            iw = 2 * j + parity + dx
                            if iw < in_w:
                                t[dy, c * in_w + iw,
                                  parity * _LANES + oc * out_w + j] = w[oc, c, dy, dx]
    return t


def _pad_bias(b, out_w):
    v = np.zeros((1, _LANES), np.float32)
    b = np.asarray(b, np.float32)
    for oc in range(b.shape[0]):
        v[0, oc * out_w:(oc + 1) * out_w] = b[oc]
    return v


def _fc1_blocks(w_fc1):
    """fc1 weight split by pooled spatial row r, lane layout oc*5 + j (pad 128)."""
    w = np.asarray(w_fc1, np.float32).reshape(_OC2, _PH2, _PW2, _FC1)
    blk = np.zeros((_PH2, _LANES, _FC1), np.float32)
    for r in range(_PH2):
        for oc in range(_OC2):
            blk[r, oc * _PW2:(oc + 1) * _PW2, :] = w[oc, r]
    return blk


def prepare_params(params):
    """Host-side, one-time, batch-independent preparation of kernel operands."""
    bf16, f32 = jnp.bfloat16, jnp.float32
    return {
        "t1": jnp.asarray(_tap_toeplitz(params["conv1_w"], _W0, _PW1), bf16),
        "b1": jnp.asarray(_pad_bias(params["conv1_b"], _PW1), f32),
        "t2": jnp.asarray(_tap_toeplitz(params["conv2_w"], _PW1, _PW2), bf16),
        "b2": jnp.asarray(_pad_bias(params["conv2_b"], _PW2), f32),
        "w1": jnp.asarray(_fc1_blocks(params["fc1_w"]), bf16),
        "bf1": jnp.asarray(params["fc1_b"], f32)[None, :],
        "wf2": jnp.asarray(params["fc2_w"], bf16),
        "bf2": jnp.asarray(params["fc2_b"], f32)[None, :],
        "wf3": jnp.asarray(params["fc3_w"], bf16),
        "bf3": jnp.asarray(params["fc3_b"], f32)[None, :],
    }


# --------------------------------- forward ----------------------------------

def lenet_fused_forward(x, prep, *, tile_n=None):
    n = x.shape[0]
    assert x.shape[1:] == (_C0, _H0, _W0), x.shape
    if tile_n is None:
        # 64-sample tiles (~4.4 MB VMEM) fit the scoped default on v5e/v6e/v7x.
        tile_n = n if n <= 64 else 64
    n_tiles = -(-n // tile_n)
    n_pad = n_tiles * tile_n

    # Pack NCHW -> rows (n, h), lanes (c*W); pad lanes 96 -> 128, batch -> tile.
    xp = jnp.transpose(x, (0, 2, 1, 3)).reshape(n, _H0, _C0 * _W0)
    xp = jnp.pad(xp, ((0, n_pad - n), (0, 0), (0, _LANES - _C0 * _W0)))
    xp = xp.reshape(n_pad * _H0, _LANES).astype(jnp.float32)

    grid_spec = pltpu.PrefetchScalarGridSpec(
        num_scalar_prefetch=0,
        grid=(n_tiles,),
        in_specs=[
            pl.BlockSpec((tile_n * _H0, _LANES), lambda i: (i, 0)),     # x
            pl.BlockSpec((_K1, _LANES, 2 * _LANES), lambda i: (0, 0, 0)),  # t1
            pl.BlockSpec((1, _LANES), lambda i: (0, 0)),                # b1
            pl.BlockSpec((_K2, _LANES, 2 * _LANES), lambda i: (0, 0, 0)),  # t2
            pl.BlockSpec((1, _LANES), lambda i: (0, 0)),                # b2
            pl.BlockSpec((_PH2, _LANES, _FC1), lambda i: (0, 0, 0)),    # w1
            pl.BlockSpec((1, _FC1), lambda i: (0, 0)),                  # bf1
            pl.BlockSpec((_FC1, _FC2), lambda i: (0, 0)),               # wf2
            pl.BlockSpec((1, _FC2), lambda i: (0, 0)),                  # bf2
            pl.BlockSpec((_FC2, _FC3), lambda i: (0, 0)),               # wf3
            pl.BlockSpec((1, _FC3), lambda i: (0, 0)),                  # bf3
        ],
        out_specs=pl.BlockSpec((tile_n, _FC3), lambda i: (i, 0)),
        scratch_shapes=[
            pltpu.VMEM((tile_n * _H0, _LANES), jnp.float32),   # W-pooled conv1
            pltpu.VMEM((tile_n * _HB1, _LANES), jnp.float32),  # a1 (pool1 out)
            pltpu.VMEM((tile_n * _HB1, _LANES), jnp.float32),  # W-pooled conv2
            pltpu.VMEM((tile_n * _HB2, _LANES), jnp.float32),  # a2 (pool2 out)
        ])

    out = pl.pallas_call(
        _lenet_kernel,
        out_shape=jax.ShapeDtypeStruct((n_pad, _FC3), jnp.float32),
        grid_spec=grid_spec,
        compiler_params=pltpu.CompilerParams(
            dimension_semantics=("parallel",)),
    )(xp, prep["t1"], prep["b1"], prep["t2"], prep["b2"],
      prep["w1"], prep["bf1"], prep["wf2"], prep["bf2"],
      prep["wf3"], prep["bf3"])
    return out[:n]


def lenet_forward(x, params):
    """Convenience wrapper: weight prep + fused kernel."""
    return lenet_fused_forward(x, prepare_params(params))


# --------------------------- reference (pure JAX) ----------------------------

def lenet_reference(x, params):
    def conv(x, w, b):
        y = jax.lax.conv_general_dilated(
            x, w, window_strides=(1, 1), padding="VALID",
            dimension_numbers=("NCHW", "OIHW", "NCHW"))
        return jax.nn.relu(y + b.reshape(1, -1, 1, 1))

    def pool(x):
        return jax.lax.reduce_window(x, -jnp.inf, jax.lax.max,
                                     (1, 1, 2, 2), (1, 1, 2, 2), "VALID")

    x = pool(conv(x, params["conv1_w"], params["conv1_b"]))
    x = pool(conv(x, params["conv2_w"], params["conv2_b"]))
    x = x.reshape(x.shape[0], -1)
    x = jax.nn.relu(x @ params["fc1_w"] + params["fc1_b"])
    x = jax.nn.relu(x @ params["fc2_w"] + params["fc2_b"])
    return x @ params["fc3_w"] + params["fc3_b"]


# ------------------------------- params init ---------------------------------

def init_params(key):
    ks = jax.random.split(key, 10)

    def u(k, shape, fan_in):
        bound = 1.0 / (fan_in ** 0.5)
        return jax.random.uniform(k, shape, jnp.float32, -bound, bound)

    return {
        "conv1_w": u(ks[0], (6, 3, 3, 3), 3 * 3 * 3),
        "conv1_b": u(ks[1], (6,), 3 * 3 * 3),
        "conv2_w": u(ks[2], (16, 6, 5, 5), 6 * 5 * 5),
        "conv2_b": u(ks[3], (16,), 6 * 5 * 5),
        # Linear weights stored as (in, out) == PyTorch weight.T
        "fc1_w": u(ks[4], (400, 120), 400),
        "fc1_b": u(ks[5], (120,), 400),
        "fc2_w": u(ks[6], (120, 84), 120),
        "fc2_b": u(ks[7], (84,), 120),
        "fc3_w": u(ks[8], (84, 10), 84),
        "fc3_b": u(ks[9], (10,), 84),
    }


if __name__ == "__main__":
    key = jax.random.PRNGKey(0)
    k_x, k_p = jax.random.split(key)
    # LeNet's classifier (Linear(400, .)) implies 3x32x32 inputs; batch = 2.
    x = jax.random.normal(k_x, (2, 3, 32, 32), dtype=jnp.float32)
    params = init_params(k_p)

    # One-time, batch-independent weight preparation.
    prep = prepare_params(params)

    fwd = jax.jit(lenet_fused_forward)
    out = jax.block_until_ready(fwd(x, prep))

    assert out.shape == (2, 10), out.shape
    assert bool(jnp.all(jnp.isfinite(out)))

    ref = jax.block_until_ready(lenet_reference(x, params))
    assert bool(jnp.allclose(out, ref, rtol=5e-2, atol=5e-2)), (out, ref)

    print("KERNEL_OK")
</pallas_src>

<mosaic_0001>
module attributes {stable_mosaic.version = 11 : i64} {
  func.func @_lenet_kernel(%arg0: i32, %arg1: memref<64x128xf32, #tpu.memory_space<vmem>>, %arg2: memref<3x128x256xbf16, #tpu.memory_space<vmem>>, %arg3: memref<1x128xf32, #tpu.memory_space<vmem>>, %arg4: memref<5x128x256xbf16, #tpu.memory_space<vmem>>, %arg5: memref<1x128xf32, #tpu.memory_space<vmem>>, %arg6: memref<5x128x120xbf16, #tpu.memory_space<vmem>>, %arg7: memref<1x120xf32, #tpu.memory_space<vmem>>, %arg8: memref<120x84xbf16, #tpu.memory_space<vmem>>, %arg9: memref<1x84xf32, #tpu.memory_space<vmem>>, %arg10: memref<84x10xbf16, #tpu.memory_space<vmem>>, %arg11: memref<1x10xf32, #tpu.memory_space<vmem>>, %arg12: memref<2x10xf32, #tpu.memory_space<vmem>>, %arg13: memref<64x128xf32, #tpu.memory_space<vmem>>, %arg14: memref<32x128xf32, #tpu.memory_space<vmem>>, %arg15: memref<32x128xf32, #tpu.memory_space<vmem>>, %arg16: memref<16x128xf32, #tpu.memory_space<vmem>>) attributes {dimension_semantics = [#tpu.dimension_semantics<parallel>], iteration_bounds = array<i64: 1>, scalar_prefetch = 0 : i64, scratch_operands = 4 : i64, tpu.core_type = #tpu.core_type<tc>, window_params = [{transform_indices = @transform_0, window_bounds = array<i64: 64, 128>}, {pipeline_mode = #tpu.pipeline_mode<synchronous>, transform_indices = @transform_1, window_bounds = array<i64: 3, 128, 256>}, {pipeline_mode = #tpu.pipeline_mode<synchronous>, transform_indices = @transform_2, window_bounds = array<i64: 1, 128>}, {pipeline_mode = #tpu.pipeline_mode<synchronous>, transform_indices = @transform_3, window_bounds = array<i64: 5, 128, 256>}, {pipeline_mode = #tpu.pipeline_mode<synchronous>, transform_indices = @transform_4, window_bounds = array<i64: 1, 128>}, {pipeline_mode = #tpu.pipeline_mode<synchronous>, transform_indices = @transform_5, window_bounds = array<i64: 5, 128, 120>}, {pipeline_mode = #tpu.pipeline_mode<synchronous>, transform_indices = @transform_6, window_bounds = array<i64: 1, 120>}, {pipeline_mode = #tpu.pipeline_mode<synchronous>, transform_indices = @transform_7, window_bounds = array<i64: 120, 84>}, {pipeline_mode = #tpu.pipeline_mode<synchronous>, transform_indices = @transform_8, window_bounds = array<i64: 1, 84>}, {pipeline_mode = #tpu.pipeline_mode<synchronous>, transform_indices = @transform_9, window_bounds = array<i64: 84, 10>}, {pipeline_mode = #tpu.pipeline_mode<synchronous>, transform_indices = @transform_10, window_bounds = array<i64: 1, 10>}, {transform_indices = @transform_11, window_bounds = array<i64: 2, 10>}]} {
    %c0 = arith.constant 0 : index
    %c0_0 = arith.constant 0 : index
    %0 = vector.load %arg1[%c0, %c0_0] : memref<64x128xf32, #tpu.memory_space<vmem>>, vector<62x128xf32>
    %1 = arith.truncf %0 : vector<62x128xf32> to vector<62x128xbf16>
    %c0_1 = arith.constant 0 : index
    %c0_2 = arith.constant 0 : index
    %c0_3 = arith.constant 0 : index
    %2 = vector.load %arg2[%c0_1, %c0_2, %c0_3] : memref<3x128x256xbf16, #tpu.memory_space<vmem>>, vector<1x128x256xbf16>
    %3 = vector.shape_cast %2 : vector<1x128x256xbf16> to vector<128x256xbf16>
    %cst = arith.constant dense<0.000000e+00> : vector<62x256xf32>
    %4 = tpu.matmul %1, %3, %cst {dimension_numbers = #tpu.dot_dimension_numbers<[1], [0], [0], [1], [0, 0, 1, 1], [], []>} : vector<62x128xbf16>, vector<128x256xbf16>, vector<62x256xf32> -> vector<62x256xf32>
    %c1 = arith.constant 1 : index
    %c0_4 = arith.constant 0 : index
    %5 = vector.load %arg1[%c1, %c0_4] : memref<64x128xf32, #tpu.memory_space<vmem>>, vector<62x128xf32>
    %6 = arith.truncf %5 : vector<62x128xf32> to vector<62x128xbf16>
    %c1_5 = arith.constant 1 : index
    %c0_6 = arith.constant 0 : index
    %c0_7 = arith.constant 0 : index
    %7 = vector.load %arg2[%c1_5, %c0_6, %c0_7] : memref<3x128x256xbf16, #tpu.memory_space<vmem>>, vector<1x128x256xbf16>
    %8 = vector.shape_cast %7 : vector<1x128x256xbf16> to vector<128x256xbf16>
    %cst_8 = arith.constant dense<0.000000e+00> : vector<62x256xf32>
    %9 = tpu.matmul %6, %8, %cst_8 {dimension_numbers = #tpu.dot_dimension_numbers<[1], [0], [0], [1], [0, 0, 1, 1], [], []>} : vector<62x128xbf16>, vector<128x256xbf16>, vector<62x256xf32> -> vector<62x256xf32>
    %10 = arith.addf %4, %9 : vector<62x256xf32>
    %c2 = arith.constant 2 : index
    %c0_9 = arith.constant 0 : index
    %11 = vector.load %arg1[%c2, %c0_9] : memref<64x128xf32, #tpu.memory_space<vmem>>, vector<62x128xf32>
    %12 = arith.truncf %11 : vector<62x128xf32> to vector<62x128xbf16>
    %c2_10 = arith.constant 2 : index
    %c0_11 = arith.constant 0 : index
    %c0_12 = arith.constant 0 : index
    %13 = vector.load %arg2[%c2_10, %c0_11, %c0_12] : memref<3x128x256xbf16, #tpu.memory_space<vmem>>, vector<1x128x256xbf16>
    %14 = vector.shape_cast %13 : vector<1x128x256xbf16> to vector<128x256xbf16>
    %cst_13 = arith.constant dense<0.000000e+00> : vector<62x256xf32>
    %15 = tpu.matmul %12, %14, %cst_13 {dimension_numbers = #tpu.dot_dimension_numbers<[1], [0], [0], [1], [0, 0, 1, 1], [], []>} : vector<62x128xbf16>, vector<128x256xbf16>, vector<62x256xf32> -> vector<62x256xf32>
    %16 = arith.addf %10, %15 : vector<62x256xf32>
    %17 = vector.extract_strided_slice %16 {offsets = [0, 0], sizes = [62, 128], strides = [1, 1]} : vector<62x256xf32> to vector<62x128xf32>
    %18 = vector.extract_strided_slice %16 {offsets = [0, 128], sizes = [62, 128], strides = [1, 1]} : vector<62x256xf32> to vector<62x128xf32>
    %19 = arith.maximumf %17, %18 : vector<62x128xf32>
    %c0_14 = arith.constant 0 : index
    %c0_15 = arith.constant 0 : index
    %20 = vector.load %arg13[%c0_14, %c0_15] : memref<64x128xf32, #tpu.memory_space<vmem>>, vector<62x128xf32>
    tpu.vector_store %arg13[%c0_14, %c0_15], %19 {strides = array<i32>} : memref<64x128xf32, #tpu.memory_space<vmem>>, vector<62x128xf32>,
    %cst_16 = arith.constant 0.000000e+00 : f32
    %21 = vector.broadcast %cst_16 : f32 to vector<2x128xf32>
    %c62 = arith.constant 62 : index
    %c0_17 = arith.constant 0 : index
    %22 = vector.load %arg13[%c62, %c0_17] : memref<64x128xf32, #tpu.memory_space<vmem>>, vector<2x128xf32>
    tpu.vector_store %arg13[%c62, %c0_17], %21 {strides = array<i32>} : memref<64x128xf32, #tpu.memory_space<vmem>>, vector<2x128xf32>,
    %c0_18 = arith.constant 0 : index
    %c0_19 = arith.constant 0 : index
    %23 = tpu.strided_load %arg13[%c0_18, %c0_19] {strides = array<i32: 2, 1>} : memref<64x128xf32, #tpu.memory_space<vmem>>, vector<32x128xf32>
    %c1_20 = arith.constant 1 : index
    %c0_21 = arith.constant 0 : index
    %24 = tpu.strided_load %arg13[%c1_20, %c0_21] {strides = array<i32: 2, 1>} : memref<64x128xf32, #tpu.memory_space<vmem>>, vector<32x128xf32>
    %25 = arith.maximumf %23, %24 : vector<32x128xf32>
    %c0_22 = arith.constant 0 : index
    %c0_23 = arith.constant 0 : index
    %26 = vector.load %arg3[%c0_22, %c0_23] : memref<1x128xf32, #tpu.memory_space<vmem>>, vector<1x128xf32>
    %27 = vector.broadcast %26 : vector<1x128xf32> to vector<32x128xf32>
    %28 = arith.addf %25, %27 : vector<32x128xf32>
    %cst_24 = arith.constant 0.000000e+00 : f32
    %29 = vector.broadcast %cst_24 : f32 to vector<32x128xf32>
    %30 = arith.maximumf %28, %29 : vector<32x128xf32>
    %c0_25 = arith.constant 0 : index
    %c0_26 = arith.constant 0 : index
    %31 = vector.load %arg14[%c0_25, %c0_26] : memref<32x128xf32, #tpu.memory_space<vmem>>, vector<32x128xf32>
    tpu.vector_store %arg14[%c0_25, %c0_26], %30 {strides = array<i32>} : memref<32x128xf32, #tpu.memory_space<vmem>>, vector<32x128xf32>,
    %c0_27 = arith.constant 0 : index
    %c0_28 = arith.constant 0 : index
    %32 = vector.load %arg14[%c0_27, %c0_28] : memref<32x128xf32, #tpu.memory_space<vmem>>, vector<28x128xf32>
    %33 = arith.truncf %32 : vector<28x128xf32> to vector<28x128xbf16>
    %c0_29 = arith.constant 0 : index
    %c0_30 = arith.constant 0 : index
    %c0_31 = arith.constant 0 : index
    %34 = vector.load %arg4[%c0_29, %c0_30, %c0_31] : memref<5x128x256xbf16, #tpu.memory_space<vmem>>, vector<1x128x256xbf16>
    %35 = vector.shape_cast %34 : vector<1x128x256xbf16> to vector<128x256xbf16>
    %cst_32 = arith.constant dense<0.000000e+00> : vector<28x256xf32>
    %36 = tpu.matmul %33, %35, %cst_32 {dimension_numbers = #tpu.dot_dimension_numbers<[1], [0], [0], [1], [0, 0, 1, 1], [], []>} : vector<28x128xbf16>, vector<128x256xbf16>, vector<28x256xf32> -> vector<28x256xf32>
    %c1_33 = arith.constant 1 : index
    %c0_34 = arith.constant 0 : index
    %37 = vector.load %arg14[%c1_33, %c0_34] : memref<32x128xf32, #tpu.memory_space<vmem>>, vector<28x128xf32>
    %38 = arith.truncf %37 : vector<28x128xf32> to vector<28x128xbf16>
    %c1_35 = arith.constant 1 : index
    %c0_36 = arith.constant 0 : index
    %c0_37 = arith.constant 0 : index
    %39 = vector.load %arg4[%c1_35, %c0_36, %c0_37] : memref<5x128x256xbf16, #tpu.memory_space<vmem>>, vector<1x128x256xbf16>
    %40 = vector.shape_cast %39 : vector<1x128x256xbf16> to vector<128x256xbf16>
    %cst_38 = arith.constant dense<0.000000e+00> : vector<28x256xf32>
    %41 = tpu.matmul %38, %40, %cst_38 {dimension_numbers = #tpu.dot_dimension_numbers<[1], [0], [0], [1], [0, 0, 1, 1], [], []>} : vector<28x128xbf16>, vector<128x256xbf16>, vector<28x256xf32> -> vector<28x256xf32>
    %42 = arith.addf %36, %41 : vector<28x256xf32>
    %c2_39 = arith.constant 2 : index
    %c0_40 = arith.constant 0 : index
    %43 = vector.load %arg14[%c2_39, %c0_40] : memref<32x128xf32, #tpu.memory_space<vmem>>, vector<28x128xf32>
    %44 = arith.truncf %43 : vector<28x128xf32> to vector<28x128xbf16>
    %c2_41 = arith.constant 2 : index
    %c0_42 = arith.constant 0 : index
    %c0_43 = arith.constant 0 : index
    %45 = vector.load %arg4[%c2_41, %c0_42, %c0_43] : memref<5x128x256xbf16, #tpu.memory_space<vmem>>, vector<1x128x256xbf16>
    %46 = vector.shape_cast %45 : vector<1x128x256xbf16> to vector<128x256xbf16>
    %cst_44 = arith.constant dense<0.000000e+00> : vector<28x256xf32>
    %47 = tpu.matmul %44, %46, %cst_44 {dimension_numbers = #tpu.dot_dimension_numbers<[1], [0], [0], [1], [0, 0, 1, 1], [], []>} : vector<28x128xbf16>, vector<128x256xbf16>, vector<28x256xf32> -> vector<28x256xf32>
    %48 = arith.addf %42, %47 : vector<28x256xf32>
    %c3 = arith.constant 3 : index
    %c0_45 = arith.constant 0 : index
    %49 = vector.load %arg14[%c3, %c0_45] : memref<32x128xf32, #tpu.memory_space<vmem>>, vector<28x128xf32>
    %50 = arith.truncf %49 : vector<28x128xf32> to vector<28x128xbf16>
    %c3_46 = arith.constant 3 : index
    %c0_47 = arith.constant 0 : index
    %c0_48 = arith.constant 0 : index
    %51 = vector.load %arg4[%c3_46, %c0_47, %c0_48] : memref<5x128x256xbf16, #tpu.memory_space<vmem>>, vector<1x128x256xbf16>
    %52 = vector.shape_cast %51 : vector<1x128x256xbf16> to vector<128x256xbf16>
    %cst_49 = arith.constant dense<0.000000e+00> : vector<28x256xf32>
    %53 = tpu.matmul %50, %52, %cst_49 {dimension_numbers = #tpu.dot_dimension_numbers<[1], [0], [0], [1], [0, 0, 1, 1], [], []>} : vector<28x128xbf16>, vector<128x256xbf16>, vector<28x256xf32> -> vector<28x256xf32>
    %54 = arith.addf %48, %53 : vector<28x256xf32>
    %c4 = arith.constant 4 : index
    %c0_50 = arith.constant 0 : index
    %55 = vector.load %arg14[%c4, %c0_50] : memref<32x128xf32, #tpu.memory_space<vmem>>, vector<28x128xf32>
    %56 = arith.truncf %55 : vector<28x128xf32> to vector<28x128xbf16>
    %c4_51 = arith.constant 4 : index
    %c0_52 = arith.constant 0 : index
    %c0_53 = arith.constant 0 : index
    %57 = vector.load %arg4[%c4_51, %c0_52, %c0_53] : memref<5x128x256xbf16, #tpu.memory_space<vmem>>, vector<1x128x256xbf16>
    %58 = vector.shape_cast %57 : vector<1x128x256xbf16> to vector<128x256xbf16>
    %cst_54 = arith.constant dense<0.000000e+00> : vector<28x256xf32>
    %59 = tpu.matmul %56, %58, %cst_54 {dimension_numbers = #tpu.dot_dimension_numbers<[1], [0], [0], [1], [0, 0, 1, 1], [], []>} : vector<28x128xbf16>, vector<128x256xbf16>, vector<28x256xf32> -> vector<28x256xf32>
    %60 = arith.addf %54, %59 : vector<28x256xf32>
    %61 = vector.extract_strided_slice %60 {offsets = [0, 0], sizes = [28, 128], strides = [1, 1]} : vector<28x256xf32> to vector<28x128xf32>
    %62 = vector.extract_strided_slice %60 {offsets = [0, 128], sizes = [28, 128], strides = [1, 1]} : vector<28x256xf32> to vector<28x128xf32>
    %63 = arith.maximumf %61, %62 : vector<28x128xf32>
    %c0_55 = arith.constant 0 : index
    %c0_56 = arith.constant 0 : index
    %64 = vector.load %arg15[%c0_55, %c0_56] : memref<32x128xf32, #tpu.memory_space<vmem>>, vector<28x128xf32>
    tpu.vector_store %arg15[%c0_55, %c0_56], %63 {strides = array<i32>} : memref<32x128xf32, #tpu.memory_space<vmem>>, vector<28x128xf32>,
    %cst_57 = arith.constant 0.000000e+00 : f32
    %65 = vector.broadcast %cst_57 : f32 to vector<4x128xf32>
    %c28 = arith.constant 28 : index
    %c0_58 = arith.constant 0 : index
    %66 = vector.load %arg15[%c28, %c0_58] : memref<32x128xf32, #tpu.memory_space<vmem>>, vector<4x128xf32>
    tpu.vector_store %arg15[%c28, %c0_58], %65 {strides = array<i32>} : memref<32x128xf32, #tpu.memory_space<vmem>>, vector<4x128xf32>,
    %c0_59 = arith.constant 0 : index
    %c0_60 = arith.constant 0 : index
    %67 = tpu.strided_load %arg15[%c0_59, %c0_60] {strides = array<i32: 2, 1>} : memref<32x128xf32, #tpu.memory_space<vmem>>, vector<16x128xf32>
    %c1_61 = arith.constant 1 : index
    %c0_62 = arith.constant 0 : index
    %68 = tpu.strided_load %arg15[%c1_61, %c0_62] {strides = array<i32: 2, 1>} : memref<32x128xf32, #tpu.memory_space<vmem>>, vector<16x128xf32>
    %69 = arith.maximumf %67, %68 : vector<16x128xf32>
    %c0_63 = arith.constant 0 : index
    %c0_64 = arith.constant 0 : index
    %70 = vector.load %arg5[%c0_63, %c0_64] : memref<1x128xf32, #tpu.memory_space<vmem>>, vector<1x128xf32>
    %71 = vector.broadcast %70 : vector<1x128xf32> to vector<16x128xf32>
    %72 = arith.addf %69, %71 : vector<16x128xf32>
    %cst_65 = arith.constant 0.000000e+00 : f32
    %73 = vector.broadcast %cst_65 : f32 to vector<16x128xf32>
    %74 = arith.maximumf %72, %73 : vector<16x128xf32>
    %c0_66 = arith.constant 0 : index
    %c0_67 = arith.constant 0 : index
    %75 = vector.load %arg16[%c0_66, %c0_67] : memref<16x128xf32, #tpu.memory_space<vmem>>, vector<16x128xf32>
    tpu.vector_store %arg16[%c0_66, %c0_67], %74 {strides = array<i32>} : memref<16x128xf32, #tpu.memory_space<vmem>>, vector<16x128xf32>,
    %c0_68 = arith.constant 0 : index
    %c0_69 = arith.constant 0 : index
    %76 = tpu.strided_load %arg16[%c0_68, %c0_69] {strides = array<i32: 8, 1>} : memref<16x128xf32, #tpu.memory_space<vmem>>, vector<2x128xf32>
    %77 = arith.truncf %76 : vector<2x128xf32> to vector<2x128xbf16>
    %c0_70 = arith.constant 0 : index
    %c0_71 = arith.constant 0 : index
    %c0_72 = arith.constant 0 : index
    %78 = vector.load %arg6[%c0_70, %c0_71, %c0_72] : memref<5x128x120xbf16, #tpu.memory_space<vmem>>, vector<1x128x120xbf16>
    %79 = vector.shape_cast %78 : vector<1x128x120xbf16> to vector<128x120xbf16>
    %cst_73 = arith.constant dense<0.000000e+00> : vector<2x120xf32>
    %80 = tpu.matmul %77, %79, %cst_73 {dimension_numbers = #tpu.dot_dimension_numbers<[1], [0], [0], [1], [0, 0, 1, 1], [], []>} : vector<2x128xbf16>, vector<128x120xbf16>, vector<2x120xf32> -> vector<2x120xf32>
    %c1_74 = arith.constant 1 : index
    %c0_75 = arith.constant 0 : index
    %81 = tpu.strided_load %arg16[%c1_74, %c0_75] {strides = array<i32: 8, 1>} : memref<16x128xf32, #tpu.memory_space<vmem>>, vector<2x128xf32>
    %82 = arith.truncf %81 : vector<2x128xf32> to vector<2x128xbf16>
    %c1_76 = arith.constant 1 : index
    %c0_77 = arith.constant 0 : index
    %c0_78 = arith.constant 0 : index
    %83 = vector.load %arg6[%c1_76, %c0_77, %c0_78] : memref<5x128x120xbf16, #tpu.memory_space<vmem>>, vector<1x128x120xbf16>
    %84 = vector.shape_cast %83 : vector<1x128x120xbf16> to vector<128x120xbf16>
    %cst_79 = arith.constant dense<0.000000e+00> : vector<2x120xf32>
    %85 = tpu.matmul %82, %84, %cst_79 {dimension_numbers = #tpu.dot_dimension_numbers<[1], [0], [0], [1], [0, 0, 1, 1], [], []>} : vector<2x128xbf16>, vector<128x120xbf16>, vector<2x120xf32> -> vector<2x120xf32>
    %86 = arith.addf %80, %85 : vector<2x120xf32>
    %c2_80 = arith.constant 2 : index
    %c0_81 = arith.constant 0 : index
    %87 = tpu.strided_load %arg16[%c2_80, %c0_81] {strides = array<i32: 8, 1>} : memref<16x128xf32, #tpu.memory_space<vmem>>, vector<2x128xf32>
    %88 = arith.truncf %87 : vector<2x128xf32> to vector<2x128xbf16>
    %c2_82 = arith.constant 2 : index
    %c0_83 = arith.constant 0 : index
    %c0_84 = arith.constant 0 : index
    %89 = vector.load %arg6[%c2_82, %c0_83, %c0_84] : memref<5x128x120xbf16, #tpu.memory_space<vmem>>, vector<1x128x120xbf16>
    %90 = vector.shape_cast %89 : vector<1x128x120xbf16> to vector<128x120xbf16>
    %cst_85 = arith.constant dense<0.000000e+00> : vector<2x120xf32>
    %91 = tpu.matmul %88, %90, %cst_85 {dimension_numbers = #tpu.dot_dimension_numbers<[1], [0], [0], [1], [0, 0, 1, 1], [], []>} : vector<2x128xbf16>, vector<128x120xbf16>, vector<2x120xf32> -> vector<2x120xf32>
    %92 = arith.addf %86, %91 : vector<2x120xf32>
    %c3_86 = arith.constant 3 : index
    %c0_87 = arith.constant 0 : index
    %93 = tpu.strided_load %arg16[%c3_86, %c0_87] {strides = array<i32: 8, 1>} : memref<16x128xf32, #tpu.memory_space<vmem>>, vector<2x128xf32>
    %94 = arith.truncf %93 : vector<2x128xf32> to vector<2x128xbf16>
    %c3_88 = arith.constant 3 : index
    %c0_89 = arith.constant 0 : index
    %c0_90 = arith.constant 0 : index
    %95 = vector.load %arg6[%c3_88, %c0_89, %c0_90] : memref<5x128x120xbf16, #tpu.memory_space<vmem>>, vector<1x128x120xbf16>
    %96 = vector.shape_cast %95 : vector<1x128x120xbf16> to vector<128x120xbf16>
    %cst_91 = arith.constant dense<0.000000e+00> : vector<2x120xf32>
    %97 = tpu.matmul %94, %96, %cst_91 {dimension_numbers = #tpu.dot_dimension_numbers<[1], [0], [0], [1], [0, 0, 1, 1], [], []>} : vector<2x128xbf16>, vector<128x120xbf16>, vector<2x120xf32> -> vector<2x120xf32>
    %98 = arith.addf %92, %97 : vector<2x120xf32>
    %c4_92 = arith.constant 4 : index
    %c0_93 = arith.constant 0 : index
    %99 = tpu.strided_load %arg16[%c4_92, %c0_93] {strides = array<i32: 8, 1>} : memref<16x128xf32, #tpu.memory_space<vmem>>, vector<2x128xf32>
    %100 = arith.truncf %99 : vector<2x128xf32> to vector<2x128xbf16>
    %c4_94 = arith.constant 4 : index
    %c0_95 = arith.constant 0 : index
    %c0_96 = arith.constant 0 : index
    %101 = vector.load %arg6[%c4_94, %c0_95, %c0_96] : memref<5x128x120xbf16, #tpu.memory_space<vmem>>, vector<1x128x120xbf16>
    %102 = vector.shape_cast %101 : vector<1x128x120xbf16> to vector<128x120xbf16>
    %cst_97 = arith.constant dense<0.000000e+00> : vector<2x120xf32>
    %103 = tpu.matmul %100, %102, %cst_97 {dimension_numbers = #tpu.dot_dimension_numbers<[1], [0], [0], [1], [0, 0, 1, 1], [], []>} : vector<2x128xbf16>, vector<128x120xbf16>, vector<2x120xf32> -> vector<2x120xf32>
    %104 = arith.addf %98, %103 : vector<2x120xf32>
    %c0_98 = arith.constant 0 : index
    %c0_99 = arith.constant 0 : index
    %105 = vector.load %arg7[%c0_98, %c0_99] : memref<1x120xf32, #tpu.memory_space<vmem>>, vector<1x120xf32>
    %106 = vector.broadcast %105 : vector<1x120xf32> to vector<2x120xf32>
    %107 = arith.addf %104, %106 : vector<2x120xf32>
    %cst_100 = arith.constant 0.000000e+00 : f32
    %108 = vector.broadcast %cst_100 : f32 to vector<2x120xf32>
    %109 = arith.maximumf %107, %108 : vector<2x120xf32>
    %110 = arith.truncf %109 : vector<2x120xf32> to vector<2x120xbf16>
    %c0_101 = arith.constant 0 : index
    %c0_102 = arith.constant 0 : index
    %111 = vector.load %arg8[%c0_101, %c0_102] : memref<120x84xbf16, #tpu.memory_space<vmem>>, vector<120x84xbf16>
    %cst_103 = arith.constant dense<0.000000e+00> : vector<2x84xf32>
    %112 = tpu.matmul %110, %111, %cst_103 {dimension_numbers = #tpu.dot_dimension_numbers<[1], [0], [0], [1], [0, 0, 1, 1], [], []>} : vector<2x120xbf16>, vector<120x84xbf16>, vector<2x84xf32> -> vector<2x84xf32>
    %c0_104 = arith.constant 0 : index
    %c0_105 = arith.constant 0 : index
    %113 = vector.load %arg9[%c0_104, %c0_105] : memref<1x84xf32, #tpu.memory_space<vmem>>, vector<1x84xf32>
    %114 = vector.broadcast %113 : vector<1x84xf32> to vector<2x84xf32>
    %115 = arith.addf %112, %114 : vector<2x84xf32>
    %cst_106 = arith.constant 0.000000e+00 : f32
    %116 = vector.broadcast %cst_106 : f32 to vector<2x84xf32>
    %117 = arith.maximumf %115, %116 : vector<2x84xf32>
    %118 = arith.truncf %117 : vector<2x84xf32> to vector<2x84xbf16>
    %c0_107 = arith.constant 0 : index
    %c0_108 = arith.constant 0 : index
    %119 = vector.load %arg10[%c0_107, %c0_108] : memref<84x10xbf16, #tpu.memory_space<vmem>>, vector<84x10xbf16>
    %cst_109 = arith.constant dense<0.000000e+00> : vector<2x10xf32>
    %120 = tpu.matmul %118, %119, %cst_109 {dimension_numbers = #tpu.dot_dimension_numbers<[1], [0], [0], [1], [0, 0, 1, 1], [], []>} : vector<2x84xbf16>, vector<84x10xbf16>, vector<2x10xf32> -> vector<2x10xf32>
    %c0_110 = arith.constant 0 : index
    %c0_111 = arith.constant 0 : index
    %121 = vector.load %arg11[%c0_110, %c0_111] : memref<1x10xf32, #tpu.memory_space<vmem>>, vector<1x10xf32>
    %122 = vector.broadcast %121 : vector<1x10xf32> to vector<2x10xf32>
    %123 = arith.addf %120, %122 : vector<2x10xf32>
    %c0_112 = arith.constant 0 : index
    %c0_113 = arith.constant 0 : index
    %124 = vector.load %arg12[%c0_112, %c0_113] : memref<2x10xf32, #tpu.memory_space<vmem>>, vector<2x10xf32>
    tpu.vector_store %arg12[%c0_112, %c0_113], %123 {strides = array<i32>} : memref<2x10xf32, #tpu.memory_space<vmem>>, vector<2x10xf32>,
    return
  }
  func.func @transform_0(%arg0: i32) -> (i32, i32) {
    %c0_i32 = arith.constant 0 : i32
    %c0_i32_0 = arith.constant 0 : i32
    return %arg0, %c0_i32 : i32, i32
  }
  func.func @transform_1(%arg0: i32) -> (i32, i32, i32) {
    %c0_i32 = arith.constant 0 : i32
    %c0_i32_0 = arith.constant 0 : i32
    %c0_i32_1 = arith.constant 0 : i32
    %c0_i32_2 = arith.constant 0 : i32
    return %c0_i32, %c0_i32_0, %c0_i32_1 : i32, i32, i32
  }
  func.func @transform_2(%arg0: i32) -> (i32, i32) {
    %c0_i32 = arith.constant 0 : i32
    %c0_i32_0 = arith.constant 0 : i32
    %c0_i32_1 = arith.constant 0 : i32
    return %c0_i32, %c0_i32_0 : i32, i32
  }
  func.func @transform_3(%arg0: i32) -> (i32, i32, i32) {
    %c0_i32 = arith.constant 0 : i32
    %c0_i32_0 = arith.constant 0 : i32
    %c0_i32_1 = arith.constant 0 : i32
    %c0_i32_2 = arith.constant 0 : i32
    return %c0_i32, %c0_i32_0, %c0_i32_1 : i32, i32, i32
  }
  func.func @transform_4(%arg0: i32) -> (i32, i32) {
    %c0_i32 = arith.constant 0 : i32
    %c0_i32_0 = arith.constant 0 : i32
    %c0_i32_1 = arith.constant 0 : i32
    return %c0_i32, %c0_i32_0 : i32, i32
  }
  func.func @transform_5(%arg0: i32) -> (i32, i32, i32) {
    %c0_i32 = arith.constant 0 : i32
    %c0_i32_0 = arith.constant 0 : i32
    %c0_i32_1 = arith.constant 0 : i32
    %c0_i32_2 = arith.constant 0 : i32
    return %c0_i32, %c0_i32_0, %c0_i32_1 : i32, i32, i32
  }
  func.func @transform_6(%arg0: i32) -> (i32, i32) {
    %c0_i32 = arith.constant 0 : i32
    %c0_i32_0 = arith.constant 0 : i32
    %c0_i32_1 = arith.constant 0 : i32
    return %c0_i32, %c0_i32_0 : i32, i32
  }
  func.func @transform_7(%arg0: i32) -> (i32, i32) {
    %c0_i32 = arith.constant 0 : i32
    %c0_i32_0 = arith.constant 0 : i32
    %c0_i32_1 = arith.constant 0 : i32
    return %c0_i32, %c0_i32_0 : i32, i32
  }
  func.func @transform_8(%arg0: i32) -> (i32, i32) {
    %c0_i32 = arith.constant 0 : i32
    %c0_i32_0 = arith.constant 0 : i32
    %c0_i32_1 = arith.constant 0 : i32
    return %c0_i32, %c0_i32_0 : i32, i32
  }
  func.func @transform_9(%arg0: i32) -> (i32, i32) {
    %c0_i32 = arith.constant 0 : i32
    %c0_i32_0 = arith.constant 0 : i32
    %c0_i32_1 = arith.constant 0 : i32
    return %c0_i32, %c0_i32_0 : i32, i32
  }
  func.func @transform_10(%arg0: i32) -> (i32, i32) {
    %c0_i32 = arith.constant 0 : i32
    %c0_i32_0 = arith.constant 0 : i32
    %c0_i32_1 = arith.constant 0 : i32
    return %c0_i32, %c0_i32_0 : i32, i32
  }
  func.func @transform_11(%arg0: i32) -> (i32, i32) {
    %c0_i32 = arith.constant 0 : i32
    %c0_i32_0 = arith.constant 0 : i32
    return %arg0, %c0_i32 : i32, i32
  }
}

</mosaic_0001>

<bundles_post_ra>
// kernel: lenet_fused_forward.1
= control target key start
LH: loop header
LB: loop body
LE: loop exit
PB: predicated region body
PF: predicated region fallthrough
CT: control target
= control target key end

     0   :  { %v3091_v2 = vmov 0   ;;  %s3901_s0 = inlined_call_operand.vmem [shape: f32[64,128], index: 0, kind: input, shape index: {}]   ;;  %s3902_s1 = inlined_call_operand.vmem [shape: bf16[3,128,256], index: 1, kind: input, shape index: {}]   ;;  %s3903_s2 = inlined_call_operand.vmem [shape: f32[1,128], index: 2, kind: input, shape index: {}]   ;;  %s3904_s3 = inlined_call_operand.vmem [shape: bf16[5,128,256], index: 3, kind: input, shape index: {}]   ;;  %s3905_s4 = inlined_call_operand.vmem [shape: f32[1,128], index: 4, kind: input, shape index: {}]   ;;  %s3906_s5 = inlined_call_operand.vmem [shape: bf16[5,128,120], index: 5, kind: input, shape index: {}]   ;;  %s3907_s6 = inlined_call_operand.vmem [shape: f32[1,120], index: 6, kind: input, shape index: {}]   ;;  %s3908_s7 = inlined_call_operand.vmem [shape: bf16[120,84], index: 7, kind: input, shape index: {}]   ;;  %s3909_s8 = inlined_call_operand.vmem [shape: f32[1,84], index: 8, kind: input, shape index: {}]   ;;  %s3910_s9 = inlined_call_operand.vmem [shape: bf16[84,10], index: 9, kind: input, shape index: {}]   ;;  %s3911_s10 = inlined_call_operand.vmem [shape: f32[1,10], index: 10, kind: input, shape index: {}]   ;;  %s3912_s11 = inlined_call_operand.hbm [shape: f32[2,10], index: 11, kind: output, shape index: {}]  }
   0x1   :  { %v2823_v0 = vld [vmem:[%s3902_s1 + $0xf4] ss:$8 sps:$4 sm:$0xff]   ;;  %209 = vmatprep.mubr.bf16.mxu0 %v3091_v2  ;;  %362 = vmatprep.mubr.bf16.mxu1 %v3091_v2  ;;  %v2827_v3 = vld [vmem:[%s3902_s1 + $0xf0] ss:$8 sps:$4 sm:$0xff]   ;;  %v2829_v5 = vld [vmem:[%s3902_s1 + $0xe4] ss:$8 sps:$4 sm:$0xff]  }
   0x2   :  { %v2825_v1 = vld [vmem:[%s3902_s1 + $0x74] ss:$8 sps:$4 sm:$0xff]   ;;  %177 = vmatprep.subr.bf16.mxu0 %v2823_v0  ;;  %v2828_v4 = vld [vmem:[%s3902_s1 + $0x70] ss:$8 sps:$4 sm:$0xff]   ;;  %v2831_v6 = vld [vmem:[%s3902_s1 + $0x64] ss:$8 sps:$4 sm:$0xff]  }
   0x3   :  { %330 = vmatprep.subr.bf16.mxu1 %v2825_v1  ;;  %178 = vmatpush1.bf16.msra.mxu0 %v2827_v3  ;;  %v2833_v7 = vld [vmem:[%s3902_s1 + $0xe0] ss:$8 sps:$4 sm:$0xff]   ;;  %v2835_v9 = vld [vmem:[%s3902_s1 + $0xd4] ss:$8 sps:$4 sm:$0xff]   ;;  %v2839_v11 = vld [vmem:[%s3902_s1 + $0xd0] ss:$8 sps:$4 sm:$0xff]  }
   0x4   :  { %331 = vmatpush1.bf16.msra.mxu1 %v2828_v4  ;;  %179 = vmatprep.subr.bf16.mxu0 %v2829_v5  ;;  %v2834_v8 = vld [vmem:[%s3902_s1 + $0x60] ss:$8 sps:$4 sm:$0xff]   ;;  %v2837_v10 = vld [vmem:[%s3902_s1 + $0x54] ss:$8 sps:$4 sm:$0xff]   ;;  %v2840_v12 = vld [vmem:[%s3902_s1 + $0x50] ss:$8 sps:$4 sm:$0xff]  }
   0x5   :  { %332 = vmatprep.subr.bf16.mxu1 %v2831_v6  ;;  %v2841_v13 = vld [vmem:[%s3902_s1 + $0xc4] ss:$8 sps:$4 sm:$0xff]   ;;  %v2845_v15 = vld [vmem:[%s3902_s1 + $0xc0] ss:$8 sps:$4 sm:$0xff]   ;;  %v2847_v17 = vld [vmem:[%s3902_s1 + $0xb4] ss:$8 sps:$4 sm:$0xff]  }
   0x6   :  { %v2843_v14 = vld [vmem:[%s3902_s1 + $0x44] ss:$8 sps:$4 sm:$0xff]   ;;  %v2846_v16 = vld [vmem:[%s3902_s1 + $0x40] ss:$8 sps:$4 sm:$0xff]   ;;  %v2849_v18 = vld [vmem:[%s3902_s1 + $0x34] ss:$8 sps:$4 sm:$0xff]  }
   0x7   :  { %180 = vmatpush1.bf16.msra.mxu0 %v2833_v7  ;;  %v2851_v19 = vld [vmem:[%s3902_s1 + $0xb0] ss:$8 sps:$4 sm:$0xff]   ;;  %v2853_v21 = vld [vmem:[%s3902_s1 + $0xa4] ss:$8 sps:$4 sm:$0xff]   ;;  %v2857_v23 = vld [vmem:[%s3902_s1 + $0xa0] ss:$8 sps:$4 sm:$0xff]  }
   0x8   :  { %333 = vmatpush1.bf16.msra.mxu1 %v2834_v8  ;;  %181 = vmatprep.subr.bf16.mxu0 %v2835_v9  ;;  %v2852_v20 = vld [vmem:[%s3902_s1 + $0x30] ss:$8 sps:$4 sm:$0xff]   ;;  %v2855_v22 = vld [vmem:[%s3902_s1 + $0x24] ss:$8 sps:$4 sm:$0xff]   ;;  %v2858_v24 = vld [vmem:[%s3902_s1 + $0x20] ss:$8 sps:$4 sm:$0xff]  }
   0x9   :  { %334 = vmatprep.subr.bf16.mxu1 %v2837_v10  ;;  %v2859_v25 = vld [vmem:[%s3902_s1 + $0x94] ss:$8 sps:$4 sm:$0xff]   ;;  %v2863_v27 = vld [vmem:[%s3902_s1 + $0x90] ss:$8 sps:$4 sm:$0xff]   ;;  %v2865_v29 = vld [vmem:[%s3902_s1 + $0x84] ss:$8 sps:$4 sm:$0xff]  }
   0xa   :  { %v2861_v26 = vld [vmem:[%s3902_s1 + $0x14] ss:$8 sps:$4 sm:$0xff]   ;;  %v2864_v28 = vld [vmem:[%s3902_s1 + $0x10] ss:$8 sps:$4 sm:$0xff]   ;;  %v2867_v30 = vld [vmem:[%s3902_s1 + $0x4] ss:$8 sps:$4 sm:$0xff]  }
   0xb   :  { %182 = vmatpush1.bf16.msra.mxu0 %v2839_v11  ;;  %v2869_v31 = vld [vmem:[%s3902_s1 + $0x80] ss:$8 sps:$4 sm:$0xff]   ;;  %v2873_v37 = vld [vmem:[%s3902_s1 + $0x174] ss:$8 sps:$4 sm:$0xff]   ;;  %v2871_v40 = vld [vmem:[%s3902_s1 + $0x170] ss:$8 sps:$4 sm:$0xff]  }
   0xc   :  { %335 = vmatpush1.bf16.msra.mxu1 %v2840_v12  ;;  %183 = vmatprep.subr.bf16.mxu0 %v2841_v13  ;;  %v2870_v32 = vld [vmem:[%s3902_s1] ss:$8 sps:$4 sm:$0xff]   ;;  %v2876_v41 = vld [vmem:[%s3902_s1 + $0x164] ss:$8 sps:$4 sm:$0xff]   ;;  %v70_v43 = vld [vmem:[%s3901_s0 + $0x11] sm:$0xff] }
   0xd   :  { %336 = vmatprep.subr.bf16.mxu1 %v2843_v14  ;;  %v68_v33 = vld [vmem:[%s3901_s0 + $0x1] sm:$0xff]  ;;  %v69_v34 = vld [vmem:[%s3901_s0 + $0x9] sm:$0xff]  ;;  %v71_v44 = vld [vmem:[%s3901_s0 + $0x19] sm:$0xff] }
   0xe   :  { %v40_v35 = vld [vmem:[%s3901_s0] sm:$0xff]  ;;  %v41_v36 = vld [vmem:[%s3901_s0 + $0x8] sm:$0xff]  ;;  %v76_v38 = vpack.c.bf16 %v69_v34, %v68_v33  ;;  %v42_v45 = vld [vmem:[%s3901_s0 + $0x10] sm:$0xff]  ;;  %v77_v48 = vpack.c.bf16 %v71_v44, %v70_v43 }
   0xf   :  { %184 = vmatpush1.bf16.msra.mxu0 %v2845_v15  ;;  %v48_v39 = vpack.c.bf16 %v41_v36, %v40_v35  ;;  %v2874_v42 = vld [vmem:[%s3902_s1 + $0x160] ss:$8 sps:$4 sm:$0xff]   ;;  %v43_v46 = vld [vmem:[%s3901_s0 + $0x18] sm:$0xff]  ;;  %v2882_v51 = vld [vmem:[%s3902_s1 + $0x144] ss:$8 sps:$4 sm:$0xff]  }
  0x10   :  { %337 = vmatpush1.bf16.msra.mxu1 %v2846_v16  ;;  %185 = vmatprep.subr.bf16.mxu0 %v2847_v17  ;;  %v2879_v47 = vld [vmem:[%s3902_s1 + $0x154] ss:$8 sps:$4 sm:$0xff]   ;;  %v49_v49 = vpack.c.bf16 %v43_v46, %v42_v45  ;;  %v2877_v50 = vld [vmem:[%s3902_s1 + $0x150] ss:$8 sps:$4 sm:$0xff]   ;;  %v2880_v52 = vld [vmem:[%s3902_s1 + $0x140] ss:$8 sps:$4 sm:$0xff]  }
  0x11   :  { %338 = vmatprep.subr.bf16.mxu1 %v2849_v18  ;;  %v72_v53 = vld [vmem:[%s3901_s0 + $0x21] sm:$0xff]  ;;  %v73_v54 = vld [vmem:[%s3901_s0 + $0x29] sm:$0xff]  ;;  %v2885_v57 = vld [vmem:[%s3902_s1 + $0x134] ss:$8 sps:$4 sm:$0xff]  }
  0x12   :  { %v44_v55 = vld [vmem:[%s3901_s0 + $0x20] sm:$0xff]  ;;  %v45_v56 = vld [vmem:[%s3901_s0 + $0x28] sm:$0xff]  ;;  %v2883_v58 = vld [vmem:[%s3902_s1 + $0x130] ss:$8 sps:$4 sm:$0xff]   ;;  %v78_v59 = vpack.c.bf16 %v73_v54, %v72_v53 }
  0x13   :  { %186 = vmatpush1.bf16.msra.mxu0 %v2851_v19  ;;  %v50_v60 = vpack.c.bf16 %v45_v56, %v44_v55  ;;  %v2888_v61 = vld [vmem:[%s3902_s1 + $0x124] ss:$8 sps:$4 sm:$0xff]   ;;  %v2886_v62 = vld [vmem:[%s3902_s1 + $0x120] ss:$8 sps:$4 sm:$0xff]   ;;  %v74_v63 = vld [vmem:[%s3901_s0 + $0x31] sm:$0xff] }
  0x14   :  { %339 = vmatpush1.bf16.msra.mxu1 %v2852_v20  ;;  %187 = vmatprep.subr.bf16.mxu0 %v2853_v21  ;;  %v75_v0 = vld [vmem:[%s3901_s0 + $0x39] sm:$0x3f]  ;;  %v46_v1 = vld [vmem:[%s3901_s0 + $0x30] sm:$0xff]  ;;  %v2894_v8 = vld [vmem:[%s3902_s1 + $0x104] ss:$8 sps:$4 sm:$0xff]  }
  0x15   :  { %340 = vmatprep.subr.bf16.mxu1 %v2855_v22  ;;  %v47_v3 = vld [vmem:[%s3901_s0 + $0x38] sm:$0x3f]  ;;  %v79_v6 = vpack.c.bf16 %v75_v0, %v74_v63  ;;  %v2892_v9 = vld [vmem:[%s3902_s1 + $0x100] ss:$8 sps:$4 sm:$0xff]  }
  0x16   :  { %v2891_v4 = vld [vmem:[%s3902_s1 + $0x114] ss:$8 sps:$4 sm:$0xff]   ;;  %v2889_v5 = vld [vmem:[%s3902_s1 + $0x110] ss:$8 sps:$4 sm:$0xff]   ;;  %v51_v7 = vpack.c.bf16 %v47_v3, %v46_v1  ;;  %v403_v10 = vld [vmem:[%s3901_s0 + $0x2] sm:$0xff] }
  0x17   :  { %188 = vmatpush1.bf16.msra.mxu0 %v2857_v23  ;;  %v404_v11 = vld [vmem:[%s3901_s0 + $0xa] sm:$0xff]  ;;  %v405_v13 = vld [vmem:[%s3901_s0 + $0x12] sm:$0xff]  ;;  %v406_v14 = vld [vmem:[%s3901_s0 + $0x1a] sm:$0xff] }
  0x18   :  { %341 = vmatpush1.bf16.msra.mxu1 %v2858_v24  ;;  %189 = vmatprep.subr.bf16.mxu0 %v2859_v25  ;;  %v411_v12 = vpack.c.bf16 %v404_v11, %v403_v10  ;;  %v412_v15 = vpack.c.bf16 %v406_v14, %v405_v13  ;;  %v407_v16 = vld [vmem:[%s3901_s0 + $0x22] sm:$0xff]  ;;  %v408_v17 = vld [vmem:[%s3901_s0 + $0x2a] sm:$0xff]  ;;  %v409_v19 = vld [vmem:[%s3901_s0 + $0x32] sm:$0xff] }
  0x19   :  { %342 = vmatprep.subr.bf16.mxu1 %v2861_v26  ;;  %v413_v18 = vpack.c.bf16 %v408_v17, %v407_v16  ;;  %v410_v20 = vld [vmem:[%s3901_s0 + $0x3a] sm:$0x3f] }
  0x1a   :  { %v414_v21 = vpack.c.bf16 %v410_v20, %v409_v19 }
  0x1b   :  { %190 = vmatpush1.bf16.msra.mxu0 %v2863_v27 }
  0x1c   :  { %343 = vmatpush1.bf16.msra.mxu1 %v2864_v28  ;;  %191 = vmatprep.subr.bf16.mxu0 %v2865_v29 }
  0x1d   :  { %344 = vmatprep.subr.bf16.mxu1 %v2867_v30 }
  0x1f   :  { %192 = vmatpush1.bf16.msra.mxu0 %v2869_v31 }
  0x20   :  { %345 = vmatpush1.bf16.msra.mxu1 %v2870_v32  ;;  %512 = vmatprep.subr.bf16.mxu0 %v2873_v37 }
  0x22   :  { %210 = vmatmul.mubr.bf16.vlgmr.msra.gmra.mxu0 %v76_v38 }
  0x23   :  { %363 = vmatmul.mubr.bf16.vlgmr.msra.gmra.mxu1 %v48_v39  ;;  %513 = vmatpush1.bf16.msra.mxu0 %v2871_v40 }
  0x24   :  { %219 = vmatprep.mubr.bf16.mxu0 %v3091_v2  ;;  %514 = vmatprep.subr.bf16.mxu0 %v2876_v41 }
  0x25   :  { %372 = vmatprep.mubr.bf16.mxu1 %v3091_v2 }
  0x27   :  { %515 = vmatpush1.bf16.msra.mxu0 %v2874_v42 }
  0x28   :  { %516 = vmatprep.subr.bf16.mxu0 %v2879_v47 }
  0x2a   :  { %220 = vmatmul.mubr.bf16.gmra.mxu0 %v77_v48 }
  0x2b   :  { %373 = vmatmul.mubr.bf16.gmra.mxu1 %v49_v49  ;;  %517 = vmatpush1.bf16.msra.mxu0 %v2877_v50 }
  0x2c   :  { %229 = vmatprep.mubr.bf16.mxu0 %v3091_v2  ;;  %518 = vmatprep.subr.bf16.mxu0 %v2882_v51 }
  0x2d   :  { %382 = vmatprep.mubr.bf16.mxu1 %v3091_v2 }
  0x2f   :  { %519 = vmatpush1.bf16.msra.mxu0 %v2880_v52 }
  0x30   :  { %520 = vmatprep.subr.bf16.mxu0 %v2885_v57 }
  0x32   :  { %230 = vmatmul.mubr.bf16.gmra.mxu0 %v78_v59 }
  0x33   :  { %383 = vmatmul.mubr.bf16.gmra.mxu1 %v50_v60  ;;  %521 = vmatpush1.bf16.msra.mxu0 %v2883_v58 }
  0x34   :  { %239 = vmatprep.mubr.bf16.mxu0 %v3091_v2  ;;  %522 = vmatprep.subr.bf16.mxu0 %v2888_v61 }
  0x35   :  { %392 = vmatprep.mubr.bf16.mxu1 %v3091_v2 }
  0x37   :  { %523 = vmatpush1.bf16.msra.mxu0 %v2886_v62 }
  0x38   :  { %524 = vmatprep.subr.bf16.mxu0 %v2891_v4 }
  0x3a   :  { %240 = vmatmul.mubr.bf16.gmra.mxu0 %v79_v6 }
  0x3b   :  { %393 = vmatmul.mubr.bf16.gmra.mxu1 %v51_v7  ;;  %525 = vmatpush1.bf16.msra.mxu0 %v2889_v5 }
  0x3c   :  { %544 = vmatprep.mubr.bf16.mxu0 %v3091_v2  ;;  %526 = vmatprep.subr.bf16.mxu0 %v2894_v8 }
  0x3d   :  { %813 = vmatprep.mubr.bf16.mxu1 %v3091_v2 }
  0x3f   :  { %527 = vmatpush1.bf16.msra.mxu0 %v2892_v9 }
  0x42   :  { %545 = vmatmul.mubr.bf16.vlgmr.msra.gmra.mxu0 %v411_v12 }
  0x43   :  { %554 = vmatprep.mubr.bf16.mxu0 %v3091_v2 }
  0x4a   :  { %555 = vmatmul.mubr.bf16.gmra.mxu0 %v412_v15 }
  0x4b   :  { %564 = vmatprep.mubr.bf16.mxu0 %v3091_v2 }
  0x52   :  { %565 = vmatmul.mubr.bf16.gmra.mxu0 %v413_v18 }
  0x53   :  { %574 = vmatprep.mubr.bf16.mxu0 %v3091_v2 }
  0x5a   :  { %575 = vmatmul.mubr.bf16.gmra.mxu0 %v414_v21 }
  0x5b   :  { %946 = vmatprep.mubr.bf16.mxu0 %v3091_v2 }
  0x5c   :  { %16 = vsyncpa [#allocation7], 0  ;;  %v2897_v22 = vld [vmem:[%s3904_s3 + $0x74] ss:$8 sps:$4 sm:$0xff]   ;;  %v2895_v23 = vld [vmem:[%s3904_s3 + $0x70] ss:$8 sps:$4 sm:$0xff]  }
  0x5d   :  { %914 = vmatprep.subr.bf16.mxu0 %v2897_v22  ;;  %v2900_v24 = vld [vmem:[%s3904_s3 + $0x64] ss:$8 sps:$4 sm:$0xff]   ;;  %v2898_v25 = vld [vmem:[%s3904_s3 + $0x60] ss:$8 sps:$4 sm:$0xff]   ;;  %v2906_v26 = vld [vmem:[%s3904_s3 + $0x54] ss:$8 sps:$4 sm:$0xff]  }
  0x5e   :  { %915 = vmatpush1.bf16.msra.mxu0 %v2895_v23  ;;  %v2904_v27 = vld [vmem:[%s3904_s3 + $0x50] ss:$8 sps:$4 sm:$0xff]   ;;  %v2912_v28 = vld [vmem:[%s3904_s3 + $0x44] ss:$8 sps:$4 sm:$0xff]   ;;  %v2910_v29 = vld [vmem:[%s3904_s3 + $0x40] ss:$8 sps:$4 sm:$0xff]  }
  0x5f   :  { %916 = vmatprep.subr.bf16.mxu0 %v2900_v24  ;;  %v2903_v30 = vld [vmem:[%s3904_s3 + $0xf4] ss:$8 sps:$4 sm:$0xff]   ;;  %v2901_v31 = vld [vmem:[%s3904_s3 + $0xf0] ss:$8 sps:$4 sm:$0xff]   ;;  %v2909_v34 = vld [vmem:[%s3904_s3 + $0xe4] ss:$8 sps:$4 sm:$0xff]  }
  0x60   :  { %v2918_v32 = vld [vmem:[%s3904_s3 + $0x34] ss:$8 sps:$4 sm:$0xff]   ;;  %781 = vmatprep.subr.bf16.mxu1 %v2903_v30  ;;  %v2916_v33 = vld [vmem:[%s3904_s3 + $0x30] ss:$8 sps:$4 sm:$0xff]   ;;  %v2907_v35 = vld [vmem:[%s3904_s3 + $0xe0] ss:$8 sps:$4 sm:$0xff]  }
  0x61   :  { %782 = vmatpush1.bf16.msra.mxu1 %v2901_v31  ;;  %v2924_v36 = vld [vmem:[%s3904_s3 + $0x24] ss:$8 sps:$4 sm:$0xff]   ;;  %v2922_v37 = vld [vmem:[%s3904_s3 + $0x20] ss:$8 sps:$4 sm:$0xff]   ;;  %v2915_v38 = vld [vmem:[%s3904_s3 + $0xd4] ss:$8 sps:$4 sm:$0xff]  }
  0x62   :  { %917 = vmatpush1.bf16.msra.mxu0 %v2898_v25  ;;  %783 = vmatprep.subr.bf16.mxu1 %v2909_v34  ;;  %v2913_v39 = vld [vmem:[%s3904_s3 + $0xd0] ss:$8 sps:$4 sm:$0xff]   ;;  %v2930_v40 = vld [vmem:[%s3904_s3 + $0x14] ss:$8 sps:$4 sm:$0xff]   ;;  %v2921_v42 = vld [vmem:[%s3904_s3 + $0xc4] ss:$8 sps:$4 sm:$0xff]  }
  0x63   :  { %918 = vmatprep.subr.bf16.mxu0 %v2906_v26  ;;  %v2928_v41 = vld [vmem:[%s3904_s3 + $0x10] ss:$8 sps:$4 sm:$0xff]   ;;  %v2919_v43 = vld [vmem:[%s3904_s3 + $0xc0] ss:$8 sps:$4 sm:$0xff]   ;;  %v2936_v44 = vld [vmem:[%s3904_s3 + $0x4] ss:$8 sps:$4 sm:$0xff]  }
  0x64   :  { %v2934_v45 = vld [vmem:[%s3904_s3] ss:$8 sps:$4 sm:$0xff]   ;;  %v2927_v46 = vld [vmem:[%s3904_s3 + $0xb4] ss:$8 sps:$4 sm:$0xff]   ;;  %v2925_v47 = vld [vmem:[%s3904_s3 + $0xb0] ss:$8 sps:$4 sm:$0xff]  }
  0x65   :  { %784 = vmatpush1.bf16.msra.mxu1 %v2907_v35  ;;  %v2942_v48 = vld [vmem:[%s3904_s3 + $0x1f4] ss:$8 sps:$4 sm:$0xff]   ;;  %v3092_v49 = vmov 0.0   ;;  %v2933_v50 = vld [vmem:[%s3904_s3 + $0xa4] ss:$8 sps:$4 sm:$0xff]   ;;  %vm3093_vm0 = vmmov 0  }
  0x66   :  { %919 = vmatpush1.bf16.msra.mxu0 %v2904_v27  ;;  %785 = vmatprep.subr.bf16.mxu1 %v2915_v38  ;;  %617 = vst [vmem:[#allocation2 + $0x3e] sm:$0x3] %v3092_v49  ;;  %1467 = vst [vmem:[#allocation4 + $0x1c] sm:$0xf] %v3092_v49  ;;  %v2931_v51 = vld [vmem:[%s3904_s3 + $0xa0] ss:$8 sps:$4 sm:$0xff]  }
  0x67   :  { %920 = vmatprep.subr.bf16.mxu0 %v2912_v28  ;;  %v2939_v52 = vld [vmem:[%s3904_s3 + $0x94] ss:$8 sps:$4 sm:$0xff]   ;;  %v2937_v53 = vld [vmem:[%s3904_s3 + $0x90] ss:$8 sps:$4 sm:$0xff]   ;;  %v2943_v54 = vld [vmem:[%s3904_s3 + $0x80] ss:$8 sps:$4 sm:$0xff]  }
  0x68   :  { %v2945_v55 = vld [vmem:[%s3904_s3 + $0x84] ss:$8 sps:$4 sm:$0xff]   ;;  %v2951_v56 = vld [vmem:[%s3904_s3 + $0x174] ss:$8 sps:$4 sm:$0xff]   ;;  %vm2112_vm1 = vcmask 1043456   ;;  %vm2213_vm2 = vcmask 1041408  }
  0x69   :  { %786 = vmatpush1.bf16.msra.mxu1 %v2913_v39  ;;  %vm2108_vm3 = vcmask 982016   ;;  %vm2209_vm4 = vcmask 687104   ;;  %s3094_s12 = smov [#allocation6]   ;;  %vm2257_vm5 = vcmask 74752  }
  0x6a   :  { %921 = vmatpush1.bf16.msra.mxu0 %v2910_v29  ;;  %787 = vmatprep.subr.bf16.mxu1 %v2921_v42 }
  0x6b   :  { %922 = vmatprep.subr.bf16.mxu0 %v2918_v32 }
  0x6d   :  { %788 = vmatpush1.bf16.msra.mxu1 %v2919_v43 }
  0x6e   :  { %923 = vmatpush1.bf16.msra.mxu0 %v2916_v33  ;;  %789 = vmatprep.subr.bf16.mxu1 %v2927_v46 }
  0x6f   :  { %924 = vmatprep.subr.bf16.mxu0 %v2924_v36 }
  0x71   :  { %790 = vmatpush1.bf16.msra.mxu1 %v2925_v47 }
  0x72   :  { %925 = vmatpush1.bf16.msra.mxu0 %v2922_v37  ;;  %791 = vmatprep.subr.bf16.mxu1 %v2933_v50 }
  0x73   :  { %926 = vmatprep.subr.bf16.mxu0 %v2930_v40 }
  0x75   :  { %792 = vmatpush1.bf16.msra.mxu1 %v2931_v51 }
  0x76   :  { %927 = vmatpush1.bf16.msra.mxu0 %v2928_v41  ;;  %793 = vmatprep.subr.bf16.mxu1 %v2939_v52 }
  0x77   :  { %928 = vmatprep.subr.bf16.mxu0 %v2936_v44 }
  0x79   :  { %794 = vmatpush1.bf16.msra.mxu1 %v2937_v53 }
  0x7a   :  { %929 = vmatpush1.bf16.msra.mxu0 %v2934_v45  ;;  %795 = vmatprep.subr.bf16.mxu1 %v2945_v55 }
  0x7b   :  { %1234 = vmatprep.subr.bf16.mxu0 %v2942_v48 }
  0x7d   :  { %796 = vmatpush1.bf16.msra.mxu1 %v2943_v54 }
  0x7e   :  { %1070 = vmatprep.subr.bf16.mxu1 %v2951_v56 }
  0xe2   :  { %v211_v57 = vpop.f32.mrf.mxu0 }
  0xe3   :  { %v364_v58 = vpop.f32.mrf.mxu1 }
  0xe4   :  { %v213_v59 = vpop.f32.mrf.mxu0  ;;  %v365_v20 = vadd.f32 %v364_v58, %v211_v57  ;;  %v3500_v58 = vld [vmem:[%s3903_s2] ss:$0 sm:$0xff] }
  0xe5   :  { %v366_v60 = vpop.f32.mrf.mxu1 }
  0xe6   :  { %v215_v61 = vpop.f32.mrf.mxu0  ;;  %v367_v21 = vadd.f32 %v366_v60, %v213_v59 }
  0xe7   :  { %v368_v62 = vpop.f32.mrf.mxu1 }
  0xe8   :  { %v217_v63 = vpop.f32.mrf.mxu0  ;;  %v369_v27 = vadd.f32 %v368_v62, %v215_v61 }
  0xe9   :  { %v370_v1 = vpop.f32.mrf.mxu1 }
  0xea   :  { %v221_v0 = vpop.f32.mrf.mxu0  ;;  %v371_v28 = vadd.f32 %v370_v1, %v217_v63 }
  0xeb   :  { %v374_v5 = vpop.f32.mrf.mxu1 }
  0xec   :  { %v223_v3 = vpop.f32.mrf.mxu0  ;;  %v375_v35 = vadd.f32 %v374_v5, %v221_v0 }
  0xed   :  { %v376_v8 = vpop.f32.mrf.mxu1 }
  0xee   :  { %v225_v4 = vpop.f32.mrf.mxu0  ;;  %v377_v36 = vadd.f32 %v376_v8, %v223_v3 }
  0xef   :  { %v378_v11 = vpop.f32.mrf.mxu1 }
  0xf0   :  { %v227_v6 = vpop.f32.mrf.mxu0  ;;  %v379_v43 = vadd.f32 %v378_v11, %v225_v4 }
  0xf1   :  { %v380_v14 = vpop.f32.mrf.mxu1 }
  0xf2   :  { %v231_v7 = vpop.f32.mrf.mxu0  ;;  %v381_v44 = vadd.f32 %v380_v14, %v227_v6 }
  0xf3   :  { %v384_v17 = vpop.f32.mrf.mxu1 }
  0xf4   :  { %v233_v9 = vpop.f32.mrf.mxu0  ;;  %v385_v52 = vadd.f32 %v384_v17, %v231_v7 }
  0xf5   :  { %v386_v22 = vpop.f32.mrf.mxu1 }
  0xf6   :  { %v235_v10 = vpop.f32.mrf.mxu0  ;;  %v387_v53 = vadd.f32 %v386_v22, %v233_v9 }
  0xf7   :  { %v388_v30 = vpop.f32.mrf.mxu1 }
  0xf8   :  { %v237_v12 = vpop.f32.mrf.mxu0  ;;  %v389_v0 = vadd.f32 %v388_v30, %v235_v10 }
  0xf9   :  { %v390_v38 = vpop.f32.mrf.mxu1 }
  0xfa   :  { %v3489_v13 = vpop.f32.mrf.mxu0  ;;  %v391_v1 = vadd.f32 %v390_v38, %v237_v12 }
  0xfb   :  { %v394_v46 = vpop.f32.mrf.mxu1 }
  0xfc   :  { %v3491_v15 = vpop.f32.mrf.mxu0  ;;  %v395_v14 = vadd.f32 %v394_v46, %v3489_v13  ;;  %v2958_v46 = vld [vmem:[%s3904_s3 + $0x1c0] ss:$8 sps:$4 sm:$0xff]  }
  0xfd   :  { %v396_v55 = vpop.f32.mrf.mxu1 }
  0xfe   :  { %v3493_v16 = vpop.f32.mrf.mxu0  ;;  %v397_v17 = vadd.f32 %v396_v55, %v3491_v15  ;;  %v2957_v55 = vld [vmem:[%s3904_s3 + $0x164] ss:$8 sps:$4 sm:$0xff]  }
  0xff   :  { %v398_v5 = vpop.f32.mrf.mxu1 }
 0x100   :  { %v3495_v18 = vpop.f32.mrf.mxu0 }
 0x102   :  { %v546_v19 = vpop.f32.mrf.mxu0 }
 0x103   :  { %v585_v24 = vadd.f32 %v546_v19, %v365_v20  ;;  %v400_v20 = vpop.f32.mrf.mxu1 }
 0x104   :  { %v548_v23 = vpop.f32.mrf.mxu0 }
 0x105   :  { %v586_v25 = vadd.f32 %v548_v23, %v367_v21 }
 0x106   :  { %v550_v26 = vpop.f32.mrf.mxu0 }
 0x107   :  { %v601_v29 = vmax.f32 %v585_v24, %v586_v25  ;;  %v587_v32 = vadd.f32 %v550_v26, %v369_v27  ;;  %v399_v26 = vadd.f32 %v398_v5, %v3493_v16  ;;  %v401_v27 = vadd.f32 %v400_v20, %v3495_v18  ;;  %v2948_v16 = vld [vmem:[%s3904_s3 + $0x1e4] ss:$8 sps:$4 sm:$0xff]  }
 0x108   :  { %v552_v31 = vpop.f32.mrf.mxu0  ;;  %v2969_v5 = vld [vmem:[%s3904_s3 + $0x144] ss:$8 sps:$4 sm:$0xff]  }
 0x109   :  { %609 = vst [vmem:[#allocation2] sm:$0xff] %v601_v29  ;;  %v588_v33 = vadd.f32 %v552_v31, %v371_v28 }
 0x10a   :  { %v556_v34 = vpop.f32.mrf.mxu0 }
 0x10b   :  { %v602_v37 = vmax.f32 %v587_v32, %v588_v33  ;;  %v589_v40 = vadd.f32 %v556_v34, %v375_v35  ;;  %v2940_v32 = vld [vmem:[%s3904_s3 + $0x1f0] ss:$8 sps:$4 sm:$0xff]  }
 0x10c   :  { %v558_v39 = vpop.f32.mrf.mxu0 }
 0x10d   :  { %610 = vst [vmem:[#allocation2 + $0x8] sm:$0xff] %v602_v37  ;;  %v590_v41 = vadd.f32 %v558_v39, %v377_v36  ;;  %v2946_v37 = vld [vmem:[%s3904_s3 + $0x1e0] ss:$8 sps:$4 sm:$0xff]   ;;  %v2954_v39 = vld [vmem:[%s3904_s3 + $0x1d4] ss:$8 sps:$4 sm:$0xff]  }
 0x10e   :  { %v560_v42 = vpop.f32.mrf.mxu0 }
 0x10f   :  { %v603_v45 = vmax.f32 %v589_v40, %v590_v41  ;;  %v591_v48 = vadd.f32 %v560_v42, %v379_v43  ;;  %v2952_v41 = vld [vmem:[%s3904_s3 + $0x1d0] ss:$8 sps:$4 sm:$0xff]   ;;  %v2960_v42 = vld [vmem:[%s3904_s3 + $0x1c4] ss:$8 sps:$4 sm:$0xff]  }
 0x110   :  { %v562_v47 = vpop.f32.mrf.mxu0 }
 0x111   :  { %611 = vst [vmem:[#allocation2 + $0x10] sm:$0xff] %v603_v45  ;;  %v592_v50 = vadd.f32 %v562_v47, %v381_v44  ;;  %v2966_v47 = vld [vmem:[%s3904_s3 + $0x1b4] ss:$8 sps:$4 sm:$0xff]  }
 0x112   :  { %v566_v51 = vpop.f32.mrf.mxu0 }
 0x113   :  { %v604_v54 = vmax.f32 %v591_v48, %v592_v50  ;;  %v593_v61 = vadd.f32 %v566_v51, %v385_v52  ;;  %v2949_v51 = vld [vmem:[%s3904_s3 + $0x170] ss:$8 sps:$4 sm:$0xff]  }
 0x114   :  { %v618_v56 = vld [vmem:[#allocation2] ss:$2 sm:$0xff]  ;;  %v626_v57 = vld [vmem:[#allocation2 + $0x1] ss:$2 sm:$0xff]  ;;  %v568_v59 = vpop.f32.mrf.mxu0 }
 0x115   :  { %v633_v60 = vmax.f32 %v618_v56, %v626_v57  ;;  %612 = vst [vmem:[#allocation2 + $0x18] sm:$0xff] %v604_v54  ;;  %v594_v62 = vadd.f32 %v568_v59, %v387_v53  ;;  %v2964_v56 = vld [vmem:[%s3904_s3 + $0x1b0] ss:$8 sps:$4 sm:$0xff]   ;;  %v2972_v57 = vld [vmem:[%s3904_s3 + $0x1a4] ss:$8 sps:$4 sm:$0xff]  }
 0x116   :  { %v570_v63 = vpop.f32.mrf.mxu0  ;;  %v2963_v59 = vld [vmem:[%s3904_s3 + $0x154] ss:$8 sps:$4 sm:$0xff]  }
 0x117   :  { %v644_v3 = vadd.f32 %v3500_v58, %v633_v60  ;;  %v605_v4 = vmax.f32 %v593_v61, %v594_v62  ;;  %v595_v8 = vadd.f32 %v570_v63, %v389_v0  ;;  %v2970_v60 = vld [vmem:[%s3904_s3 + $0x1a0] ss:$8 sps:$4 sm:$0xff]   ;;  %v2978_v61 = vld [vmem:[%s3904_s3 + $0x194] ss:$8 sps:$4 sm:$0xff]   ;;  %v2961_v62 = vld [vmem:[%s3904_s3 + $0x150] ss:$8 sps:$4 sm:$0xff]  }
 0x118   :  { %v572_v6 = vpop.f32.mrf.mxu0 }
 0x119   :  { %v648_v7 = vmax.f32 %v644_v3, 0.0  ;;  %613 = vst [vmem:[#allocation2 + $0x20] sm:$0xff] %v605_v4  ;;  %v596_v9 = vadd.f32 %v572_v6, %v391_v1  ;;  %v2976_v6 = vld [vmem:[%s3904_s3 + $0x190] ss:$8 sps:$4 sm:$0xff]  }
 0x11a   :  { %v576_v11 = vpop.f32.mrf.mxu0 }
 0x11b   :  { %652 = vst [vmem:[#allocation3] sm:$0xff] %v648_v7  ;;  %v606_v19 = vmax.f32 %v595_v8, %v596_v9  ;;  %v597_v23 = vadd.f32 %v576_v11, %v395_v14  ;;  %v2967_v8 = vld [vmem:[%s3904_s3 + $0x140] ss:$8 sps:$4 sm:$0xff]   ;;  %v2975_v9 = vld [vmem:[%s3904_s3 + $0x134] ss:$8 sps:$4 sm:$0xff]  }
 0x11c   :  { %v620_v21 = vld [vmem:[#allocation2 + $0x10] ss:$2 sm:$0xff]  ;;  %v628_v10 = vld [vmem:[#allocation2 + $0x11] ss:$2 sm:$0xff]  ;;  %v578_v12 = vpop.f32.mrf.mxu0  ;;  %v2982_v11 = vld [vmem:[%s3904_s3 + $0x180] ss:$8 sps:$4 sm:$0xff]  }
 0x11d   :  { %v634_v22 = vmax.f32 %v620_v21, %v628_v10  ;;  %614 = vst [vmem:[#allocation2 + $0x28] sm:$0xff] %v606_v19  ;;  %v598_v24 = vadd.f32 %v578_v12, %v397_v17  ;;  %v2973_v17 = vld [vmem:[%s3904_s3 + $0x130] ss:$8 sps:$4 sm:$0xff]   ;;  %v2981_v19 = vld [vmem:[%s3904_s3 + $0x124] ss:$8 sps:$4 sm:$0xff]  }
 0x11e   :  { %v580_v25 = vpop.f32.mrf.mxu0  ;;  %v2979_v10 = vld [vmem:[%s3904_s3 + $0x120] ss:$8 sps:$4 sm:$0xff]   ;;  %v2987_v12 = vld [vmem:[%s3904_s3 + $0x114] ss:$8 sps:$4 sm:$0xff]  }
 0x11f   :  { %v645_v28 = vadd.f32 %v3500_v58, %v634_v22  ;;  %v607_v13 = vmax.f32 %v597_v23, %v598_v24  ;;  %v599_v30 = vadd.f32 %v580_v25, %v399_v26  ;;  %v2985_v24 = vld [vmem:[%s3904_s3 + $0x110] ss:$8 sps:$4 sm:$0xff]   ;;  %v2990_v25 = vld [vmem:[%s3904_s3 + $0x104] ss:$8 sps:$4 sm:$0xff]  }
 0x120   :  { %v582_v29 = vpop.f32.mrf.mxu0 }
 0x121   :  { %v649_v15 = vmax.f32 %v645_v28, 0.0  ;;  %615 = vst [vmem:[#allocation2 + $0x30] sm:$0xff] %v607_v13  ;;  %v600_v31 = vadd.f32 %v582_v29, %v401_v27  ;;  %v2988_v27 = vld [vmem:[%s3904_s3 + $0x100] ss:$8 sps:$4 sm:$0xff]   ;;  %v2993_v28 = vld [vmem:[%s3904_s3 + $0x274] ss:$8 sps:$4 sm:$0xff]  }
 0x123   :  { %653 = vst [vmem:[#allocation3 + $0x8] sm:$0xff] %v649_v15  ;;  %v608_v33 = vmax.f32 %v599_v30, %v600_v31  ;;  %v660_v34 = vpack.c.bf16 %v649_v15, %v648_v7  ;;  %v2984_v7 = vld [vmem:[%s3904_s3 + $0x184] ss:$8 sps:$4 sm:$0xff]   ;;  %v2991_v15 = vld [vmem:[%s3904_s3 + $0x270] ss:$8 sps:$4 sm:$0xff]  }
 0x124   :  { %v622_v18 = vld [vmem:[#allocation2 + $0x20] ss:$2 sm:$0xff]  ;;  %v630_v35 = vld [vmem:[#allocation2 + $0x21] ss:$2 sm:$0xff] }
 0x125   :  { %v635_v36 = vmax.f32 %v622_v18, %v630_v35  ;;  %616 = vst [vmem:[#allocation2 + $0x38] sm:$0x3f] %v608_v33  ;;  %947 = vmatmul.mubr.bf16.vlgmr.msra.gmra.mxu0 %v660_v34  ;;  %v2996_v31 = vld [vmem:[%s3904_s3 + $0x264] ss:$8 sps:$4 sm:$0xff]   ;;  %v2999_v33 = vld [vmem:[%s3904_s3 + $0x254] ss:$8 sps:$4 sm:$0xff]  }
 0x126   :  { %1235 = vmatpush1.bf16.msra.mxu0 %v2940_v32  ;;  %956 = vmatprep.mubr.bf16.mxu0 %v3091_v2  ;;  %v2994_v32 = vld [vmem:[%s3904_s3 + $0x260] ss:$8 sps:$4 sm:$0xff]   ;;  %v2997_v18 = vld [vmem:[%s3904_s3 + $0x250] ss:$8 sps:$4 sm:$0xff]  }
 0x127   :  { %v646_v38 = vadd.f32 %v3500_v58, %v635_v36  ;;  %1236 = vmatprep.subr.bf16.mxu0 %v2948_v16  ;;  %v3002_v36 = vld [vmem:[%s3904_s3 + $0x244] ss:$8 sps:$4 sm:$0xff]  }
 0x129   :  { %v650_v40 = vmax.f32 %v646_v38, 0.0  ;;  %v3005_v38 = vld [vmem:[%s3904_s3 + $0x234] ss:$8 sps:$4 sm:$0xff]  }
 0x12a   :  { %1237 = vmatpush1.bf16.msra.mxu0 %v2946_v37  ;;  %v678_v52 = vld [vmem:[#allocation3 + $0x1] sm:$0xff] }
 0x12b   :  { %654 = vst [vmem:[#allocation3 + $0x10] sm:$0xff] %v650_v40  ;;  %1238 = vmatprep.subr.bf16.mxu0 %v2954_v39  ;;  %v1131_v20 = vld [vmem:[#allocation3 + $0x3] sm:$0xff]  ;;  %v3003_v39 = vld [vmem:[%s3904_s3 + $0x230] ss:$8 sps:$4 sm:$0xff]  }
 0x12c   :  { %v624_v43 = vld [vmem:[#allocation2 + $0x30] ss:$2 sm:$0xff]  ;;  %v632_v44 = vld [vmem:[#allocation2 + $0x31] ss:$2 sm:$0xff]  ;;  %v967_v29 = vld [vmem:[#allocation3 + $0x2] sm:$0xff] }
 0x12d   :  { %v636_v45 = vmax.f32 %v624_v43, %v632_v44  ;;  %v3000_v37 = vld [vmem:[%s3904_s3 + $0x240] ss:$8 sps:$4 sm:$0xff]   ;;  %v3009_v43 = vld [vmem:[%s3904_s3 + $0x210] ss:$8 sps:$4 sm:$0xff]   ;;  %v3014_v44 = vld [vmem:[%s3904_s3 + $0x204] ss:$8 sps:$4 sm:$0xff]  }
 0x12e   :  { %1239 = vmatpush1.bf16.msra.mxu0 %v2952_v41  ;;  %v3006_v41 = vld [vmem:[%s3904_s3 + $0x220] ss:$8 sps:$4 sm:$0xff]  }
 0x12f   :  { %1240 = vmatprep.subr.bf16.mxu0 %v2960_v42  ;;  %v647_v48 = vadd.f32 %v3500_v58, %v636_v45  ;;  %v2955_v58 = vld [vmem:[%s3904_s3 + $0x160] ss:$8 sps:$4 sm:$0xff]   ;;  %v3011_v42 = vld [vmem:[%s3904_s3 + $0x214] ss:$8 sps:$4 sm:$0xff]  }
 0x130   :  { %v3012_v45 = vld [vmem:[%s3904_s3 + $0x200] ss:$8 sps:$4 sm:$0xff]  }
 0x131   :  { %v651_v50 = vmax.f32 %v647_v48, 0.0 }
 0x132   :  { %v679_v53 = vld [vmem:[#allocation3 + $0x9] sm:$0xff]  ;;  %1241 = vmatpush1.bf16.msra.mxu0 %v2958_v46 }
 0x133   :  { %v682_v54 = vpack.c.bf16 %v679_v53, %v678_v52  ;;  %1242 = vmatprep.subr.bf16.mxu0 %v2966_v47  ;;  %655 = vst [vmem:[#allocation3 + $0x18] sm:$0xff] %v651_v50  ;;  %v1132_v14 = vld [vmem:[#allocation3 + $0xb] sm:$0xff]  ;;  %v3015_v53 = vld [vmem:[%s3906_s5 + $0x78] sm:$0xff]  }
 0x134   :  { %v1135_v21 = vpack.c.bf16 %v1132_v14, %v1131_v20  ;;  %v968_v13 = vld [vmem:[#allocation3 + $0xa] sm:$0xff] }
 0x135   :  { %814 = vmatmul.mubr.bf16.vlgmr.msra.gmra.mxu1 %v682_v54  ;;  %v971_v30 = vpack.c.bf16 %v968_v13, %v967_v29  ;;  %v1296_v46 = vld [vmem:[#allocation3 + $0xc] sm:$0xff]  ;;  %v1295_v47 = vld [vmem:[#allocation3 + $0x4] sm:$0xff]  ;;  %v3016_v54 = vld [vmem:[%s3906_s5 + $0x38] sm:$0xff]  }
 0x136   :  { %1071 = vmatpush1.bf16.msra.mxu1 %v2949_v51  ;;  %823 = vmatprep.mubr.bf16.mxu1 %v3091_v2  ;;  %v1299_v48 = vpack.c.bf16 %v1296_v46, %v1295_v47 }
 0x137   :  { %1072 = vmatprep.subr.bf16.mxu1 %v2957_v55  ;;  %1243 = vmatpush1.bf16.msra.mxu0 %v2964_v56  ;;  %v3018_v55 = vld [vmem:[%s3906_s5 + $0x30] sm:$0xff]   ;;  %v3019_v56 = vld [vmem:[%s3906_s5 + $0x68] sm:$0xff]  }
 0x138   :  { %1244 = vmatprep.subr.bf16.mxu0 %v2972_v57  ;;  %v3020_v57 = vld [vmem:[%s3906_s5 + $0x28] sm:$0xff]  }
 0x13a   :  { %1073 = vmatpush1.bf16.msra.mxu1 %v2955_v58  ;;  %v680_v63 = vld [vmem:[#allocation3 + $0x11] sm:$0xff]  ;;  %v681_v0 = vld [vmem:[#allocation3 + $0x19] sm:$0xf]  ;;  %v3021_v58 = vld [vmem:[%s3906_s5 + $0x60] sm:$0xff]  }
 0x13b   :  { %v659_v1 = vld [vmem:[#allocation3 + $0x18] sm:$0xf]  ;;  %1074 = vmatprep.subr.bf16.mxu1 %v2963_v59  ;;  %v683_v3 = vpack.c.bf16 %v681_v0, %v680_v63  ;;  %1245 = vmatpush1.bf16.msra.mxu0 %v2970_v60  ;;  %v1298_v51 = vld [vmem:[#allocation3 + $0x1c] sm:$0xf]  ;;  %v3022_v59 = vld [vmem:[%s3906_s5 + $0x20] sm:$0xff]  }
 0x13c   :  { %v661_v4 = vpack.c.bf16 %v659_v1, %v650_v40  ;;  %1246 = vmatprep.subr.bf16.mxu0 %v2978_v61  ;;  %v1133_v22 = vld [vmem:[#allocation3 + $0x13] sm:$0xff]  ;;  %v1134_v23 = vld [vmem:[#allocation3 + $0x1b] sm:$0xf]  ;;  %v3008_v40 = vld [vmem:[%s3904_s3 + $0x224] ss:$8 sps:$4 sm:$0xff]  }
 0x13d   :  { %824 = vmatmul.mubr.bf16.gmra.mxu1 %v683_v3  ;;  %v1136_v26 = vpack.c.bf16 %v1134_v23, %v1133_v22  ;;  %v969_v34 = vld [vmem:[#allocation3 + $0x12] sm:$0xff]  ;;  %v970_v16 = vld [vmem:[#allocation3 + $0x1a] sm:$0xf]  ;;  %v3027_v0 = vld [vmem:[%s3906_s5 + $0x48] sm:$0xff]  }
 0x13e   :  { %957 = vmatmul.mubr.bf16.gmra.mxu0 %v661_v4  ;;  %1075 = vmatpush1.bf16.msra.mxu1 %v2961_v62  ;;  %v972_v35 = vpack.c.bf16 %v970_v16, %v969_v34  ;;  %v1297_v50 = vld [vmem:[#allocation3 + $0x14] sm:$0xff]  ;;  %v3028_v1 = vld [vmem:[%s3906_s5 + $0x8] sm:$0xff]   ;;  %v3029_v3 = vld [vmem:[%s3906_s5 + $0x40] sm:$0xff]  }
 0x13f   :  { %1266 = vmatprep.mubr.bf16.mxu0 %v3091_v2  ;;  %1076 = vmatprep.subr.bf16.mxu1 %v2969_v5  ;;  %v1300_v52 = vpack.c.bf16 %v1298_v51, %v1297_v50  ;;  %v3023_v60 = vld [vmem:[%s3906_s5 + $0x58] sm:$0xff]   ;;  %v3025_v62 = vld [vmem:[%s3906_s5 + $0x50] sm:$0xff]   ;;  %v3030_v4 = vld [vmem:[%s3906_s5] sm:$0xff]  }
 0x140   :  { %1247 = vmatpush1.bf16.msra.mxu0 %v2976_v6  ;;  %1102 = vmatprep.mubr.bf16.mxu1 %v3091_v2  ;;  %v3024_v61 = vld [vmem:[%s3906_s5 + $0x18] sm:$0xff]   ;;  %v3026_v63 = vld [vmem:[%s3906_s5 + $0x10] sm:$0xff]  }
 0x141   :  { %1248 = vmatprep.subr.bf16.mxu0 %v2984_v7 }
 0x142   :  { %1077 = vmatpush1.bf16.msra.mxu1 %v2967_v8 }
 0x143   :  { %1078 = vmatprep.subr.bf16.mxu1 %v2975_v9 }
 0x144   :  { %1249 = vmatpush1.bf16.msra.mxu0 %v2982_v11 }
 0x145   :  { %2683 = vmatprep.subr.bf16.mxu0 %v3092_v49 }
 0x146   :  { %1079 = vmatpush1.bf16.msra.mxu1 %v2973_v17 }
 0x147   :  { %1267 = vmatmul.mubr.bf16.vlgmr.msra.gmra.mxu0 %v1135_v21  ;;  %1080 = vmatprep.subr.bf16.mxu1 %v2981_v19 }
 0x148   :  { %1276 = vmatprep.mubr.bf16.mxu0 %v3091_v2  ;;  %2684 = vmatpush3.bf16.msra.mxu0 %v3015_v53 }
 0x149   :  { %2685 = vmatprep.subr.bf16.mxu0 %v3092_v49 }
 0x14a   :  { %1081 = vmatpush1.bf16.msra.mxu1 %v2979_v10 }
 0x14b   :  { %1082 = vmatprep.subr.bf16.mxu1 %v2987_v12 }
 0x14e   :  { %1083 = vmatpush1.bf16.msra.mxu1 %v2985_v24 }
 0x14f   :  { %1277 = vmatmul.mubr.bf16.gmra.mxu0 %v1136_v26  ;;  %1084 = vmatprep.subr.bf16.mxu1 %v2990_v25 }
 0x150   :  { %2699 = vmatprep.mubr.msk.bf16.mxu0 %vm3093_vm0, %v3092_v49 }
 0x152   :  { %1085 = vmatpush1.bf16.msra.mxu1 %v2988_v27 }
 0x153   :  { %1398 = vmatprep.subr.bf16.mxu1 %v2993_v28 }
 0x155   :  { %1103 = vmatmul.mubr.bf16.vlgmr.msra.gmra.mxu1 %v971_v30 }
 0x156   :  { %1399 = vmatpush1.bf16.msra.mxu1 %v2991_v15  ;;  %1112 = vmatprep.mubr.bf16.mxu1 %v3091_v2 }
 0x157   :  { %1400 = vmatprep.subr.bf16.mxu1 %v2996_v31 }
 0x15a   :  { %1401 = vmatpush1.bf16.msra.mxu1 %v2994_v32 }
 0x15b   :  { %1402 = vmatprep.subr.bf16.mxu1 %v2999_v33 }
 0x15d   :  { %1113 = vmatmul.mubr.bf16.gmra.mxu1 %v972_v35 }
 0x15e   :  { %1403 = vmatpush1.bf16.msra.mxu1 %v2997_v18  ;;  %1430 = vmatprep.mubr.bf16.mxu1 %v3091_v2 }
 0x15f   :  { %1404 = vmatprep.subr.bf16.mxu1 %v3002_v36 }
 0x162   :  { %1405 = vmatpush1.bf16.msra.mxu1 %v3000_v37 }
 0x163   :  { %1406 = vmatprep.subr.bf16.mxu1 %v3005_v38 }
 0x166   :  { %1407 = vmatpush1.bf16.msra.mxu1 %v3003_v39 }
 0x167   :  { %1408 = vmatprep.subr.bf16.mxu1 %v3008_v40 }
 0x16a   :  { %1409 = vmatpush1.bf16.msra.mxu1 %v3006_v41 }
 0x16b   :  { %1410 = vmatprep.subr.bf16.mxu1 %v3011_v42 }
 0x16e   :  { %1411 = vmatpush1.bf16.msra.mxu1 %v3009_v43 }
 0x16f   :  { %1412 = vmatprep.subr.bf16.mxu1 %v3014_v44 }
 0x172   :  { %1413 = vmatpush1.bf16.msra.mxu1 %v3012_v45 }
 0x173   :  { %2703 = vmatprep.subr.bf16.mxu1 %v3092_v49 }
 0x175   :  { %1431 = vmatmul.mubr.bf16.vlgmr.msra.gmra.mxu1 %v1299_v48 }
 0x176   :  { %1440 = vmatprep.mubr.bf16.mxu1 %v3091_v2  ;;  %2704 = vmatpush3.bf16.msra.mxu1 %v3016_v54  ;;  %v3017_v2 = vld [vmem:[%s3906_s5 + $0x70] sm:$0xff]  }
 0x177   :  { %2705 = vmatprep.subr.bf16.mxu1 %v3092_v49  ;;  %2686 = vmatpush3.bf16.msra.mxu0 %v3017_v2 }
 0x178   :  { %2687 = vmatprep.subr.bf16.mxu0 %v3092_v49 }
 0x17a   :  { %2706 = vmatpush3.bf16.msra.mxu1 %v3018_v55 }
 0x17b   :  { %2707 = vmatprep.subr.bf16.mxu1 %v3092_v49  ;;  %2688 = vmatpush3.bf16.msra.mxu0 %v3019_v56 }
 0x17c   :  { %2689 = vmatprep.subr.bf16.mxu0 %v3092_v49 }
 0x17d   :  { %1441 = vmatmul.mubr.bf16.gmra.mxu1 %v1300_v52 }
 0x17e   :  { %2708 = vmatpush3.bf16.msra.mxu1 %v3020_v57  ;;  %2719 = vmatprep.mubr.msk.bf16.mxu1 %vm3093_vm0, %v3092_v49 }
 0x17f   :  { %2709 = vmatprep.subr.bf16.mxu1 %v3092_v49  ;;  %2690 = vmatpush3.bf16.msra.mxu0 %v3021_v58 }
 0x180   :  { %2691 = vmatprep.subr.bf16.mxu0 %v3092_v49 }
 0x182   :  { %2710 = vmatpush3.bf16.msra.mxu1 %v3022_v59 }
 0x183   :  { %2711 = vmatprep.subr.bf16.mxu1 %v3092_v49  ;;  %2692 = vmatpush3.bf16.msra.mxu0 %v3023_v60 }
 0x184   :  { %2693 = vmatprep.subr.bf16.mxu0 %v3092_v49 }
 0x186   :  { %2712 = vmatpush3.bf16.msra.mxu1 %v3024_v61 }
 0x187   :  { %2713 = vmatprep.subr.bf16.mxu1 %v3092_v49  ;;  %2694 = vmatpush3.bf16.msra.mxu0 %v3025_v62 }
 0x188   :  { %2695 = vmatprep.subr.bf16.mxu0 %v3092_v49 }
 0x18a   :  { %2714 = vmatpush3.bf16.msra.mxu1 %v3026_v63 }
 0x18b   :  { %2715 = vmatprep.subr.bf16.mxu1 %v3092_v49  ;;  %2696 = vmatpush3.bf16.msra.mxu0 %v3027_v0 }
 0x18c   :  { %2697 = vmatprep.subr.bf16.mxu0 %v3092_v49 }
 0x18e   :  { %2716 = vmatpush3.bf16.msra.mxu1 %v3028_v1 }
 0x18f   :  { %2717 = vmatprep.subr.bf16.mxu1 %v3092_v49  ;;  %2698 = vmatpush3.bf16.msra.mxu0 %v3029_v3 }
 0x190   :  { %2723 = vmatprep.subr.bf16.mxu0 %v3092_v49 }
 0x192   :  { %2718 = vmatpush3.bf16.msra.mxu1 %v3030_v4 }
 0x193   :  { %2743 = vmatprep.subr.bf16.mxu1 %v3092_v49 }
 0x1e5   :  { %v948_v9 = vpop.f32.mrf.mxu0 }
 0x1e7   :  { %v950_v14 = vpop.f32.mrf.mxu0 }
 0x1e9   :  { %v952_v19 = vpop.f32.mrf.mxu0 }
 0x1eb   :  { %v954_v21 = vpop.f32.mrf.mxu0 }
 0x1f5   :  { %v815_v5 = vpop.f32.mrf.mxu1 }
 0x1f6   :  { %v949_v33 = vadd.f32 %v948_v9, %v815_v5 }
 0x1f7   :  { %v817_v6 = vpop.f32.mrf.mxu1 }
 0x1f8   :  { %v951_v34 = vadd.f32 %v950_v14, %v817_v6 }
 0x1f9   :  { %v819_v7 = vpop.f32.mrf.mxu1 }
 0x1fa   :  { %v953_v37 = vadd.f32 %v952_v19, %v819_v7 }
 0x1fb   :  { %v821_v8 = vpop.f32.mrf.mxu1 }
 0x1fc   :  { %v955_v38 = vadd.f32 %v954_v21, %v821_v8 }
 0x1fd   :  { %v825_v11 = vpop.f32.mrf.mxu1 }
 0x1fe   :  { %v958_v10 = vpop.f32.mrf.mxu0 }
 0x1ff   :  { %v827_v17 = vpop.f32.mrf.mxu1  ;;  %v959_v45 = vadd.f32 %v958_v10, %v825_v11 }
 0x200   :  { %v960_v23 = vpop.f32.mrf.mxu0 }
 0x201   :  { %v829_v20 = vpop.f32.mrf.mxu1  ;;  %v961_v47 = vadd.f32 %v960_v23, %v827_v17 }
 0x202   :  { %v962_v25 = vpop.f32.mrf.mxu0 }
 0x203   :  { %v831_v12 = vpop.f32.mrf.mxu1  ;;  %v963_v58 = vadd.f32 %v962_v25, %v829_v20 }
 0x204   :  { %v964_v27 = vpop.f32.mrf.mxu0 }
 0x205   :  { %v965_v59 = vadd.f32 %v964_v27, %v831_v12 }
 0x207   :  { %v1268_v13 = vpop.f32.mrf.mxu0 }
 0x209   :  { %v1270_v15 = vpop.f32.mrf.mxu0 }
 0x20b   :  { %v1272_v31 = vpop.f32.mrf.mxu0 }
 0x20d   :  { %v1274_v16 = vpop.f32.mrf.mxu0 }
 0x20f   :  { %v1278_v39 = vpop.f32.mrf.mxu0 }
 0x211   :  { %v1280_v51 = vpop.f32.mrf.mxu0 }
 0x213   :  { %v1282_v62 = vpop.f32.mrf.mxu0 }
 0x215   :  { %v1104_v22 = vpop.f32.mrf.mxu1  ;;  %v1284_v9 = vpop.f32.mrf.mxu0 }
 0x216   :  { %v1123_v18 = vadd.f32 %v1104_v22, %v949_v33 }
 0x217   :  { %v1106_v24 = vpop.f32.mrf.mxu1 }
 0x218   :  { %v1124_v35 = vadd.f32 %v1106_v24, %v951_v34  ;;  %v1287_v43 = vadd.f32 %v1268_v13, %v1123_v18  ;;  %v2498_v24 = vld [vmem:[%s3905_s4] ss:$0 sm:$0xff] }
 0x219   :  { %v1108_v26 = vpop.f32.mrf.mxu1 }
 0x21a   :  { %v1125_v41 = vadd.f32 %v1108_v26, %v953_v37  ;;  %v1288_v44 = vadd.f32 %v1270_v15, %v1124_v35  ;;  %v3033_v35 = vld [vmem:[%s3906_s5 + $0xb0] sm:$0xff]   ;;  %v3035_v37 = vld [vmem:[%s3906_s5 + $0xa8] sm:$0xff]  }
 0x21b   :  { %v1110_v28 = vpop.f32.mrf.mxu1 }
 0x21c   :  { %v1126_v42 = vadd.f32 %v1110_v28, %v955_v38  ;;  %v1289_v55 = vadd.f32 %v1272_v31, %v1125_v41  ;;  %v3031_v31 = vld [vmem:[%s3906_s5 + $0xb8] sm:$0xff]   ;;  %v3036_v38 = vld [vmem:[%s3906_s5 + $0xe8] sm:$0xff]  }
 0x21d   :  { %v1114_v29 = vpop.f32.mrf.mxu1  ;;  %v3039_v41 = vld [vmem:[%s3906_s5 + $0x98] sm:$0xff]  }
 0x21e   :  { %v1127_v52 = vadd.f32 %v1114_v29, %v959_v45  ;;  %v1290_v56 = vadd.f32 %v1274_v16, %v1126_v42  ;;  %v3040_v42 = vld [vmem:[%s3906_s5 + $0xd8] sm:$0xff]   ;;  %v3043_v45 = vld [vmem:[%s3906_s5 + $0x88] sm:$0xff]  }
 0x21f   :  { %v1116_v30 = vpop.f32.mrf.mxu1 }
 0x220   :  { %v1128_v54 = vadd.f32 %v1116_v30, %v961_v47  ;;  %v1291_v63 = vadd.f32 %v1278_v39, %v1127_v52  ;;  %v3037_v39 = vld [vmem:[%s3906_s5 + $0xa0] sm:$0xff]   ;;  %v3047_v52 = vld [vmem:[%s3906_s5 + $0x138] sm:$0xff]  }
 0x221   :  { %v1118_v32 = vpop.f32.mrf.mxu1  ;;  %v3045_v47 = vld [vmem:[%s3906_s5 + $0x80] sm:$0xff]  }
 0x222   :  { %v1129_v1 = vadd.f32 %v1118_v32, %v963_v58  ;;  %v1292_v5 = vadd.f32 %v1280_v51, %v1128_v54  ;;  %v3032_v32 = vld [vmem:[%s3906_s5 + $0xf8] sm:$0xff]   ;;  %v3052_v58 = vld [vmem:[%s3906_s5 + $0x110] sm:$0xff]  }
 0x223   :  { %v1120_v36 = vpop.f32.mrf.mxu1 }
 0x224   :  { %v1130_v3 = vadd.f32 %v1120_v36, %v965_v59  ;;  %v1293_v17 = vadd.f32 %v1282_v62, %v1129_v1  ;;  %v3034_v36 = vld [vmem:[%s3906_s5 + $0xf0] sm:$0xff]   ;;  %v3053_v59 = vld [vmem:[%s3906_s5 + $0x108] sm:$0xff]  }
 0x225   :  { %v3056_v1 = vld [vmem:[%s3908_s7 + $0x30] sm:$0xff]  }
 0x226   :  { %v1294_v19 = vadd.f32 %v1284_v9, %v1130_v3  ;;  %v3057_v3 = vld [vmem:[%s3908_s7 + $0x28] sm:$0xff]  }
 0x227   :  { %v3063_v9 = vld [vmem:[%s3910_s9 + $0x28] ss:$0 sps:$4 sm:$0x33]  }
 0x235   :  { %v1432_v40 = vpop.f32.mrf.mxu1 }
 0x236   :  { %v1451_v48 = vadd.f32 %v1432_v40, %v1287_v43  ;;  %v3038_v40 = vld [vmem:[%s3906_s5 + $0xe0] sm:$0xff]   ;;  %v3041_v43 = vld [vmem:[%s3906_s5 + $0x90] sm:$0xff]  }
 0x237   :  { %v1434_v46 = vpop.f32.mrf.mxu1 }
 0x238   :  { %v1452_v50 = vadd.f32 %v1434_v46, %v1288_v44  ;;  %v3042_v44 = vld [vmem:[%s3906_s5 + $0xd0] sm:$0xff]   ;;  %v3044_v46 = vld [vmem:[%s3906_s5 + $0xc8] sm:$0xff]  }
 0x239   :  { %v1436_v53 = vpop.f32.mrf.mxu1 }
 0x23a   :  { %v1459_v2 = vmax.f32 %v1451_v48, %v1452_v50  ;;  %v1453_v60 = vadd.f32 %v1436_v53, %v1289_v55  ;;  %v3046_v48 = vld [vmem:[%s3906_s5 + $0xc0] sm:$0xff]   ;;  %v3049_v55 = vld [vmem:[%s3906_s5 + $0x128] sm:$0xff]  }
 0x23b   :  { %v1438_v57 = vpop.f32.mrf.mxu1 }
 0x23c   :  { %1463 = vst [vmem:[#allocation4] sm:$0xff] %v1459_v2  ;;  %v1454_v61 = vadd.f32 %v1438_v57, %v1290_v56  ;;  %v3048_v2 = vld [vmem:[%s3906_s5 + $0x130] sm:$0xff]   ;;  %v3050_v56 = vld [vmem:[%s3906_s5 + $0x120] sm:$0xff]   ;;  %v3051_v57 = vld [vmem:[%s3906_s5 + $0x118] sm:$0xff]  }
 0x23d   :  { %v1442_v0 = vpop.f32.mrf.mxu1 }
 0x23e   :  { %v1460_v4 = vmax.f32 %v1453_v60, %v1454_v61  ;;  %v1455_v7 = vadd.f32 %v1442_v0, %v1291_v63  ;;  %v3054_v60 = vld [vmem:[%s3906_s5 + $0x100] sm:$0xff]   ;;  %v3055_v63 = vld [vmem:[%s3908_s7 + $0x38] ss:$0 sps:$4 sm:$0xff]  }
 0x23f   :  { %v1444_v6 = vpop.f32.mrf.mxu1  ;;  %v2114_v0 = vsel %vm2112_vm1, %v3055_v63, 0 }
 0x240   :  { %1464 = vst [vmem:[#allocation4 + $0x8] sm:$0xff] %v1460_v4  ;;  %v1456_v8 = vadd.f32 %v1444_v6, %v1292_v5  ;;  %v3058_v4 = vld [vmem:[%s3908_s7 + $0x20] sm:$0xff]   ;;  %v3059_v5 = vld [vmem:[%s3908_s7 + $0x18] sm:$0xff]   ;;  %v3060_v6 = vld [vmem:[%s3908_s7 + $0x10] sm:$0xff]  }
 0x241   :  { %v1446_v11 = vpop.f32.mrf.mxu1 }
 0x242   :  { %v1461_v14 = vmax.f32 %v1455_v7, %v1456_v8  ;;  %v1457_v21 = vadd.f32 %v1446_v11, %v1293_v17  ;;  %v3061_v7 = vld [vmem:[%s3908_s7 + $0x8] sm:$0xff]   ;;  %v3062_v8 = vld [vmem:[%s3908_s7] sm:$0xff]   ;;  %v2215_v11 = vsel %vm2213_vm2, %v3063_v9, 0  ;;  %v3065_v17 = vld [vmem:[%s3910_s9 + $0x18] sm:$0xff]  }
 0x243   :  { %v1448_v20 = vpop.f32.mrf.mxu1 }
 0x244   :  { %1465 = vst [vmem:[#allocation4 + $0x10] sm:$0xff] %v1461_v14  ;;  %v1458_v10 = vadd.f32 %v1448_v20, %v1294_v19  ;;  %v3064_v14 = vld [vmem:[%s3910_s9 + $0x20] sm:$0xff]   ;;  %v3066_v19 = vld [vmem:[%s3910_s9 + $0x10] sm:$0xff]  }
 0x246   :  { %v1462_v12 = vmax.f32 %v1457_v21, %v1458_v10 }
 0x247   :  { %v1468_v22 = vld [vmem:[#allocation4] ss:$2 sm:$0xff]  ;;  %v1472_v23 = vld [vmem:[#allocation4 + $0x1] ss:$2 sm:$0xff] }
 0x248   :  { %v1475_v25 = vmax.f32 %v1468_v22, %v1472_v23  ;;  %1466 = vst [vmem:[#allocation4 + $0x18] sm:$0xf] %v1462_v12 }
 0x24a   :  { %v1484_v26 = vadd.f32 %v2498_v24, %v1475_v25 }
 0x24c   :  { %v1486_v27 = vmax.f32 %v1484_v26, 0.0 }
 0x24e   :  { %1488 = vst [vmem:[#allocation5] sm:$0xff] %v1486_v27 }
 0x24f   :  { %v1470_v28 = vld [vmem:[#allocation4 + $0x10] ss:$2 sm:$0xff]  ;;  %v1474_v13 = vld [vmem:[#allocation4 + $0x11] ss:$2 sm:$0xff] }
 0x250   :  { %v1476_v29 = vmax.f32 %v1470_v28, %v1474_v13 }
 0x252   :  { %v1485_v15 = vadd.f32 %v2498_v24, %v1476_v29 }
 0x254   :  { %v1487_v30 = vmax.f32 %v1485_v15, 0.0 }
 0x256   :  { %1489 = vst [vmem:[#allocation5 + $0x8] sm:$0xff] %v1487_v30 }
 0x25d   :  { %v1509_v33 = vld [vmem:[#allocation5 + $0x1] ss:$8 sm:$0x3]  ;;  %v1490_v34 = vld [vmem:[#allocation5] ss:$8 sm:$0x3] }
 0x25e   :  { %v1510_v16 = vpack.c.bf16 %v1509_v33, %v1509_v33  ;;  %v1491_v18 = vpack.c.bf16 %v1490_v34, %v1490_v34  ;;  %v1705_v50 = vld [vmem:[#allocation5 + $0x2] ss:$8 sm:$0x3]  ;;  %v1814_v51 = vld [vmem:[#allocation5 + $0x3] ss:$8 sm:$0x3] }
 0x25f   :  { %v1706_v53 = vpack.c.bf16 %v1705_v50, %v1705_v50  ;;  %v1815_v54 = vpack.c.bf16 %v1814_v51, %v1814_v51  ;;  %v1923_v61 = vld [vmem:[#allocation5 + $0x4] ss:$8 sm:$0x3] }
 0x260   :  { %2700 = vmatmul.mubr.bf16.vlgmr.msra.gmra.mxu0 %v1510_v16  ;;  %2720 = vmatmul.mubr.bf16.vlgmr.msra.gmra.mxu1 %v1491_v18  ;;  %v1924_v62 = vpack.c.bf16 %v1923_v61, %v1923_v61  ;;  %v2603_v18 = vld [vmem:[%s3907_s6] ss:$0 sm:$0xff] }
 0x261   :  { %2724 = vmatpush3.bf16.msra.mxu0 %v3031_v31  ;;  %2744 = vmatpush3.bf16.msra.mxu1 %v3032_v32 }
 0x262   :  { %2725 = vmatprep.subr.bf16.mxu0 %v3092_v49  ;;  %2745 = vmatprep.subr.bf16.mxu1 %v3092_v49 }
 0x263   :  { %2739 = vmatprep.mubr.msk.bf16.mxu0 %vm3093_vm0, %v3092_v49  ;;  %2759 = vmatprep.mubr.msk.bf16.mxu1 %vm3093_vm0, %v3092_v49 }
 0x265   :  { %2726 = vmatpush3.bf16.msra.mxu0 %v3033_v35  ;;  %2746 = vmatpush3.bf16.msra.mxu1 %v3034_v36 }
 0x266   :  { %2727 = vmatprep.subr.bf16.mxu0 %v3092_v49  ;;  %2747 = vmatprep.subr.bf16.mxu1 %v3092_v49 }
 0x269   :  { %2728 = vmatpush3.bf16.msra.mxu0 %v3035_v37  ;;  %2748 = vmatpush3.bf16.msra.mxu1 %v3036_v38 }
 0x26a   :  { %2729 = vmatprep.subr.bf16.mxu0 %v3092_v49  ;;  %2749 = vmatprep.subr.bf16.mxu1 %v3092_v49 }
 0x26d   :  { %2730 = vmatpush3.bf16.msra.mxu0 %v3037_v39  ;;  %2750 = vmatpush3.bf16.msra.mxu1 %v3038_v40 }
 0x26e   :  { %2731 = vmatprep.subr.bf16.mxu0 %v3092_v49  ;;  %2751 = vmatprep.subr.bf16.mxu1 %v3092_v49 }
 0x271   :  { %2732 = vmatpush3.bf16.msra.mxu0 %v3039_v41  ;;  %2752 = vmatpush3.bf16.msra.mxu1 %v3040_v42  ;;  %v3067_v42 = vld [vmem:[%s3910_s9 + $0x8] sm:$0xff]  }
 0x272   :  { %2733 = vmatprep.subr.bf16.mxu0 %v3092_v49  ;;  %2753 = vmatprep.subr.bf16.mxu1 %v3092_v49 }
 0x275   :  { %2734 = vmatpush3.bf16.msra.mxu0 %v3041_v43  ;;  %2754 = vmatpush3.bf16.msra.mxu1 %v3042_v44  ;;  %v3068_v43 = vld [vmem:[%s3910_s9] sm:$0xff]   ;;  %s2265_s9 = sshll.u32 %s3094_s12, 4  ;;  %s2266_s9 = int_to_ptr.vmem [resolvable:$true] %s2265_s9 }
 0x276   :  { %2735 = vmatprep.subr.bf16.mxu0 %v3092_v49  ;;  %2755 = vmatprep.subr.bf16.mxu1 %v3092_v49  ;;  %v2604_v44 = vld [vmem:[%s3909_s8] ss:$0 sm:$0xff]  ;;  %s3069_s8 = scalar_lea.vmem %s2266_s9, 32  ;;  %p3074_p1 = scmp.lt.s32.totalorder %s2266_s9, %s2266_s9 }
 0x277   :  { %p3070_p0 = scmp.ne.s32.totalorder %s2266_s9, %s3069_s8  ;;  %p3075_p2 = scmp.lt.s32.totalorder %s3069_s8, %s3069_s8 }
 0x279   :  { %2736 = vmatpush3.bf16.msra.mxu0 %v3043_v45  ;;  %2756 = vmatpush3.bf16.msra.mxu1 %v3044_v46  ;;  %p3076_p3 = por %p3075_p2, %p3074_p1 }
 0x27a   :  { %2737 = vmatprep.subr.bf16.mxu0 %v3092_v49  ;;  %2757 = vmatprep.subr.bf16.mxu1 %v3092_v49 }
 0x27b   :  { %p3077_p4 = pnand %p3076_p3, %p3070_p0 }
 0x27d   :  { %2738 = vmatpush3.bf16.msra.mxu0 %v3045_v47  ;;  %2758 = vmatpush3.bf16.msra.mxu1 %v3046_v48 }
 0x27e   :  { %2763 = vmatprep.subr.bf16.mxu0 %v3092_v49  ;;  %2783 = vmatprep.subr.bf16.mxu1 %v3092_v49 }
 0x280   :  { %2740 = vmatmul.mubr.bf16.vlgmr.msra.gmra.mxu0 %v1706_v53  ;;  %2760 = vmatmul.mubr.bf16.vlgmr.msra.gmra.mxu1 %v1815_v54 }
 0x281   :  { %2764 = vmatpush3.bf16.msra.mxu0 %v3047_v52  ;;  %2779 = vmatprep.mubr.msk.bf16.mxu0 %vm3093_vm0, %v3092_v49 }
 0x282   :  { %2765 = vmatprep.subr.bf16.mxu0 %v3092_v49  ;;  %2799 = vmatprep.mubr.msk.bf16.mxu1 %vm3093_vm0, %v3092_v49 }
 0x283   :  { %2784 = vmatpush3.bf16.msra.mxu1 %v2114_v0 }
 0x284   :  { %2785 = vmatprep.subr.bf16.mxu1 %v3092_v49 }
 0x285   :  { %2766 = vmatpush3.bf16.msra.mxu0 %v3048_v2 }
 0x286   :  { %2767 = vmatprep.subr.bf16.mxu0 %v3092_v49 }
 0x287   :  { %2786 = vmatpush3.bf16.msra.mxu1 %v3056_v1 }
 0x288   :  { %2787 = vmatprep.subr.bf16.mxu1 %v3092_v49 }
 0x289   :  { %2768 = vmatpush3.bf16.msra.mxu0 %v3049_v55 }
 0x28a   :  { %2769 = vmatprep.subr.bf16.mxu0 %v3092_v49 }
 0x28b   :  { %2788 = vmatpush3.bf16.msra.mxu1 %v3057_v3 }
 0x28c   :  { %2789 = vmatprep.subr.bf16.mxu1 %v3092_v49 }
 0x28d   :  { %2770 = vmatpush3.bf16.msra.mxu0 %v3050_v56 }
 0x28e   :  { %2771 = vmatprep.subr.bf16.mxu0 %v3092_v49 }
 0x28f   :  { %2790 = vmatpush3.bf16.msra.mxu1 %v3058_v4 }
 0x290   :  { %2791 = vmatprep.subr.bf16.mxu1 %v3092_v49 }
 0x291   :  { %2772 = vmatpush3.bf16.msra.mxu0 %v3051_v57 }
 0x292   :  { %2773 = vmatprep.subr.bf16.mxu0 %v3092_v49 }
 0x293   :  { %2792 = vmatpush3.bf16.msra.mxu1 %v3059_v5 }
 0x294   :  { %2793 = vmatprep.subr.bf16.mxu1 %v3092_v49 }
 0x295   :  { %2774 = vmatpush3.bf16.msra.mxu0 %v3052_v58 }
 0x296   :  { %2775 = vmatprep.subr.bf16.mxu0 %v3092_v49 }
 0x297   :  { %2794 = vmatpush3.bf16.msra.mxu1 %v3060_v6 }
 0x298   :  { %2795 = vmatprep.subr.bf16.mxu1 %v3092_v49 }
 0x299   :  { %2776 = vmatpush3.bf16.msra.mxu0 %v3053_v59 }
 0x29a   :  { %2777 = vmatprep.subr.bf16.mxu0 %v3092_v49 }
 0x29b   :  { %2796 = vmatpush3.bf16.msra.mxu1 %v3061_v7 }
 0x29c   :  { %2797 = vmatprep.subr.bf16.mxu1 %v3092_v49 }
 0x29d   :  { %2778 = vmatpush3.bf16.msra.mxu0 %v3054_v60 }
 0x29e   :  { %2803 = vmatprep.subr.bf16.mxu0 %v3092_v49 }
 0x29f   :  { %2798 = vmatpush3.bf16.msra.mxu1 %v3062_v8 }
 0x2a0   :  { %2780 = vmatmul.mubr.bf16.vlgmr.msra.gmra.mxu0 %v1924_v62 }
 0x2a1   :  { %2815 = vmatprep.mubr.msk.bf16.mxu0 %vm3093_vm0, %v3092_v49  ;;  %2804 = vmatpush3.bf16.msra.mxu0 %v2215_v11 }
 0x2a2   :  { %2805 = vmatprep.subr.bf16.mxu0 %v3092_v49 }
 0x2a5   :  { %2806 = vmatpush3.bf16.msra.mxu0 %v3064_v14 }
 0x2a6   :  { %2807 = vmatprep.subr.bf16.mxu0 %v3092_v49 }
 0x2a9   :  { %2808 = vmatpush3.bf16.msra.mxu0 %v3065_v17 }
 0x2aa   :  { %2809 = vmatprep.subr.bf16.mxu0 %v3092_v49 }
 0x2ad   :  { %2810 = vmatpush3.bf16.msra.mxu0 %v3066_v19 }
 0x2ae   :  { %2811 = vmatprep.subr.bf16.mxu0 %v3092_v49 }
 0x2b1   :  { %2812 = vmatpush3.bf16.msra.mxu0 %v3067_v42 }
 0x2b2   :  { %2813 = vmatprep.subr.bf16.mxu0 %v3092_v49  ;;  %v2614_v49 = vld [vmem:[%s3911_s10] ss:$0 sm:$0xff] }
 0x2b5   :  { %2814 = vmatpush3.bf16.msra.mxu0 %v3068_v43 }
 0x320   :  { %v1610_v20 = vpop.f32.mrf.mxu0  ;;  %v1698_v21 = vpop.f32.mrf.mxu1 }
 0x321   :  { %v1699_v32 = vadd.f32 %v1698_v21, %v1610_v20 }
 0x322   :  { %v2701_v10 = vpop.f32.mrf.mxu0  ;;  %v2721_v12 = vpop.f32.mrf.mxu1 }
 0x324   :  { %v1613_v22 = vpop.f32.mrf.mxu0  ;;  %v1701_v23 = vpop.f32.mrf.mxu1 }
 0x326   :  { %v2702_v24 = vpop.f32.mrf.mxu0  ;;  %v2722_v25 = vpop.f32.mrf.mxu1 }
 0x340   :  { %v1806_v26 = vpop.f32.mrf.mxu0  ;;  %v1915_v27 = vpop.f32.mrf.mxu1 }
 0x341   :  { %v1812_v33 = vadd.f32 %v1806_v26, %v1699_v32 }
 0x342   :  { %v2741_v28 = vpop.f32.mrf.mxu0  ;;  %v2761_v13 = vpop.f32.mrf.mxu1 }
 0x343   :  { %v1921_v34 = vadd.f32 %v1915_v27, %v1812_v33 }
 0x344   :  { %v1809_v29 = vpop.f32.mrf.mxu0  ;;  %v1918_v15 = vpop.f32.mrf.mxu1 }
 0x346   :  { %v2742_v30 = vpop.f32.mrf.mxu0  ;;  %v2762_v31 = vpop.f32.mrf.mxu1 }
 0x360   :  { %v2024_v16 = vpop.f32.mrf.mxu0 }
 0x361   :  { %v2030_v35 = vadd.f32 %v2024_v16, %v1921_v34 }
 0x362   :  { %v2781_v36 = vpop.f32.mrf.mxu0 }
 0x363   :  { %v2038_v37 = vadd.f32 %v2603_v18, %v2030_v35 }
 0x364   :  { %v2027_v38 = vpop.f32.mrf.mxu0 }
 0x365   :  { %v2039_v39 = vmax.f32 %v2038_v37, 0.0 }
 0x366   :  { %v2782_v40 = vpop.f32.mrf.mxu0 }
 0x367   :  { %v2040_v41 = vpack.c.bf16 %v2039_v39, %v2039_v39 }
 0x369   :  { %2800 = vmatmul.mubr.msk.bf16.vlgmr.msra.gmra.mxu1 %vm2108_vm3, %v2040_v41 }
 0x429   :  { %v2150_v45 = vpop.f32.mrf.mxu1 }
 0x42a   :  { %v2151_v46 = vadd.f32 %v2604_v44, %v2150_v45 }
 0x42b   :  { %v2801_v47 = vpop.f32.mrf.mxu1 }
 0x42c   :  { %v2156_v48 = vmax.f32 %v2151_v46, 0.0 }
 0x42d   :  { %v2153_v50 = vpop.f32.mrf.mxu1 }
 0x42e   :  { %v2157_v51 = vpack.c.bf16 %v2156_v48, %v2156_v48 }
 0x42f   :  { %v2802_v52 = vpop.f32.mrf.mxu1 }
 0x430   :  { %2816 = vmatmul.mubr.msk.bf16.vlgmr.msra.gmra.mxu0 %vm2209_vm4, %v2157_v51 }
 0x4f0   :  { %v2251_v53 = vpop.f32.mrf.mxu0 }
 0x4f1   :  { %v2252_v54 = vadd.f32 %v2614_v49, %v2251_v53 }
 0x4f2   :  { %v2817_v2 = vpop.f32.mrf.mxu0 }
 0x4f3   :  { %2258 = vst.msk [vmem:[#allocation6] sm:$0x3] %vm2257_vm5, %v2252_v54 }
 0x4f4   :  { %v2254_v55 = vpop.f32.mrf.mxu0 }
 0x4f5   :  { %3080 = shalt.err (!%p3077_p4)
}
 0x4f6   :  { %2268 = dma.vmem_to_hbm [thread:$0]  %s2266_s9, 32, %s3912_s11, [#allocation7]   ;;  %v2818_v56 = vpop.f32.mrf.mxu0 }
 0x4f7   :  { %3089 = dma.done.wait [#allocation7], 32  }
 0x4f8   :  { %3090 = vsyncadd [#allocation7], 4294967264 }
 0x4f9   :  { %2272 = vsyncpa [#allocation7], 1 }

</bundles_post_ra>
